<compile_context>
chip_gen: v5e
topology: v5e:2x2
jax: 0.10.0
libtpu: 0.0.40
codegen_flags: <defaults>
</compile_context>

<pallas_src>
import jax
import jax.numpy as jnp
from jax.experimental import pallas as pl
from jax.experimental.pallas import tpu as pltpu

BN_EPS = 1e-5
EMB_DIM = 256
TB_MAX = 2048                          # max batch-tile rows (bf16 inputs)
VMEM_LIMIT_BYTES = 48 * 1024 * 1024    # explicit scoped-VMEM budget (fits v7x 64 MiB/TC)


# ----------------------------------- kernel -----------------------------------

def _fallback_kernel(
    u_ref, it_ref, bias_ref,
    w1u_ref, w1i_ref, b1_ref,
    w2_ref, b2_ref,
    w3_ref, b3_ref,
    w4_ref, b4_ref,
    wmf_ref, wwu_ref, wwi_ref, w5f_ref, bff_ref,
    wf2_ref,
    o_ref,
):
    f32 = jnp.float32
    bf16 = jnp.bfloat16

    u = u_ref[...]                      # (TB, 256) bf16 (streamed, no cast)
    it = it_ref[...]                    # (TB, 256) bf16
    mf = u * it                         # MF interaction, bf16

    # --- deep tower (BN scale already folded into w1..w3 / b1..b3) -----------
    h = (jnp.dot(u, w1u_ref[...], preferred_element_type=f32)
         + jnp.dot(it, w1i_ref[...], preferred_element_type=f32)
         + b1_ref[...])
    h = jnp.maximum(h, 0.0)
    h = jnp.dot(h.astype(bf16), w2_ref[...], preferred_element_type=f32) + b2_ref[...]
    h = jnp.maximum(h, 0.0)
    h = jnp.dot(h.astype(bf16), w3_ref[...], preferred_element_type=f32) + b3_ref[...]
    h = jnp.maximum(h, 0.0)
    h = jnp.dot(h.astype(bf16), w4_ref[...], preferred_element_type=f32) + b4_ref[...]
    h = jnp.maximum(h, 0.0)             # (TB, 64)

    # --- fused final hidden: mf/deep/wide heads folded into Linear(3,32) -----
    hf = (jnp.dot(mf, wmf_ref[...], preferred_element_type=f32)
          + jnp.dot(u, wwu_ref[...], preferred_element_type=f32)
          + jnp.dot(it, wwi_ref[...], preferred_element_type=f32)
          + jnp.dot(h.astype(bf16), w5f_ref[...], preferred_element_type=f32)
          + bff_ref[...])
    hf = jnp.maximum(hf, 0.0)           # (TB, 32) f32

    # N=1 final head on the VPU/XLU (multiply + lane reduce) instead of the MXU.
    final = jnp.sum(hf * wf2_ref[...], axis=-1, keepdims=True)   # (TB, 1)
    # bias_ref already contains (global + user + item bias + bf2)
    o_ref[...] = final + bias_ref[...]


# --------------------------------- pallas call ---------------------------------

def _round_up(x, m):
    return ((x + m - 1) // m) * m


def _tile_plan(batch):
    """Pick (TB, padded_batch) with an even number (>=2) of grid steps.

    Guarantees the 'parallel' grid spans both v7x TensorCores and caps TB at
    TB_MAX rows so VMEM fits comfortably on every generation.
    """
    steps = max(2, 2 * (-(-batch // (2 * TB_MAX))))   # 2 * ceil(B / (2*TB_MAX))
    tb = _round_up(-(-batch // steps), 8)             # multiple of 8 sublanes
    return tb, steps * tb


def scoreformer_forward(user_emb, item_emb, bias_plus, kp):
    """Fused fallback-model forward in a single Pallas call with a batch grid."""
    B = user_emb.shape[0]
    TB, Bp = _tile_plan(B)
    if Bp != B:
        pad = ((0, Bp - B), (0, 0))
        user_emb = jnp.pad(user_emb, pad)
        item_emb = jnp.pad(item_emb, pad)
        bias_plus = jnp.pad(bias_plus, pad)

    stream_emb = pl.BlockSpec((TB, EMB_DIM), lambda i: (i, 0))
    stream_col = pl.BlockSpec((TB, 1), lambda i: (i, 0))

    def resident(x):
        # weights: one block == full array, constant block index -> VMEM-resident
        return pl.BlockSpec(x.shape, lambda i: (0, 0))

    weights = (
        kp["w1_u"], kp["w1_i"], kp["b1"],
        kp["w2"], kp["b2"],
        kp["w3"], kp["b3"],
        kp["w4"], kp["b4"],
        kp["wmf_f"], kp["ww_u"], kp["ww_i"], kp["w5_f"], kp["bf_f"],
        kp["wf2"],
    )
    in_specs = [stream_emb, stream_emb, stream_col] + [resident(w) for w in weights]

    out = pl.pallas_call(
        _fallback_kernel,
        out_shape=jax.ShapeDtypeStruct((Bp, 1), jnp.float32),
        grid=(Bp // TB,),
        in_specs=in_specs,
        out_specs=pl.BlockSpec((TB, 1), lambda i: (i, 0)),
        compiler_params=pltpu.CompilerParams(
            dimension_semantics=("parallel",),
            vmem_limit_bytes=VMEM_LIMIT_BYTES),
    )(user_emb, item_emb, bias_plus, *weights)
    return out[:B]


# ------------------------- deterministic parameter init ------------------------

def xavier_uniform(key, fan_in, fan_out):
    # matches nn.init.xavier_uniform_(gain=1.0); stored as (in, out) = W.T
    limit = (6.0 / (fan_in + fan_out)) ** 0.5
    return jax.random.uniform(key, (fan_in, fan_out), jnp.float32, -limit, limit)


def init_params(key, num_users, num_items):
    keys = jax.random.split(key, 16)
    p = {}
    p["user_emb_table"] = 0.1 * jax.random.normal(keys[0], (num_users, 256), jnp.float32)
    p["item_emb_table"] = 0.1 * jax.random.normal(keys[1], (num_items, 256), jnp.float32)
    p["user_bias_table"] = jnp.zeros((num_users, 1), jnp.float32)
    p["item_bias_table"] = jnp.zeros((num_items, 1), jnp.float32)
    p["global_bias"] = jnp.zeros((1,), jnp.float32)
    # mf_output: Linear(256, 1)
    p["wmf"] = xavier_uniform(keys[2], 256, 1)
    p["bmf"] = jnp.zeros((1, 1), jnp.float32)
    # deep_layers
    p["w1"] = xavier_uniform(keys[3], 512, 512); p["b1"] = jnp.zeros((1, 512), jnp.float32)
    p["w2"] = xavier_uniform(keys[4], 512, 256); p["b2"] = jnp.zeros((1, 256), jnp.float32)
    p["w3"] = xavier_uniform(keys[5], 256, 128); p["b3"] = jnp.zeros((1, 128), jnp.float32)
    p["w4"] = xavier_uniform(keys[6], 128, 64);  p["b4"] = jnp.zeros((1, 64), jnp.float32)
    p["w5"] = xavier_uniform(keys[7], 64, 1);    p["b5"] = jnp.zeros((1, 1), jnp.float32)
    # wide_layer: Linear(512, 1)
    p["wwide"] = xavier_uniform(keys[8], 512, 1)
    p["bwide"] = jnp.zeros((1, 1), jnp.float32)
    # final_layer: Linear(3, 32) -> ReLU -> Linear(32, 1)
    p["wf1"] = xavier_uniform(keys[9], 3, 32);  p["bf1"] = jnp.zeros((1, 32), jnp.float32)
    p["wf2"] = xavier_uniform(keys[10], 32, 1); p["bf2"] = jnp.zeros((1, 1), jnp.float32)
    return p


def fuse_params(p):
    """Offline algebraic folds: BN scale, the three scalar heads, bf16 weights/tables."""
    bn = jnp.float32(1.0) / jnp.sqrt(jnp.float32(1.0 + BN_EPS))
    bf16 = jnp.bfloat16
    wf1 = p["wf1"]                                             # (3, 32)
    kp = {
        # bf16 tables: gather writes and kernel reads half the HBM bytes
        "user_emb_table_bf16": p["user_emb_table"].astype(bf16),
        "item_emb_table_bf16": p["item_emb_table"].astype(bf16),
        # concat removal: split w1 / fused-wide weights into user/item halves
        "w1_u": (p["w1"][:EMB_DIM] * bn).astype(bf16),
        "w1_i": (p["w1"][EMB_DIM:] * bn).astype(bf16),
        "b1": p["b1"] * bn,
        "w2": (p["w2"] * bn).astype(bf16),
        "b2": p["b2"] * bn,
        "w3": (p["w3"] * bn).astype(bf16),
        "b3": p["b3"] * bn,
        "w4": p["w4"].astype(bf16),       # no BatchNorm after the 128->64 layer
        "b4": p["b4"],
        # head fusion: (B,K)@(K,1) heads folded through Linear(3,32)
        "wmf_f": (p["wmf"] @ wf1[0:1, :]).astype(bf16),            # (256, 32)
        "ww_u": (p["wwide"][:EMB_DIM] @ wf1[2:3, :]).astype(bf16), # (256, 32)
        "ww_i": (p["wwide"][EMB_DIM:] @ wf1[2:3, :]).astype(bf16), # (256, 32)
        "w5_f": (p["w5"] @ wf1[1:2, :]).astype(bf16),              # (64, 32)
        "bf_f": (p["bf1"] + p["bmf"] @ wf1[0:1, :]
                 + p["b5"] @ wf1[1:2, :] + p["bwide"] @ wf1[2:3, :]),   # (1, 32)
        # final 32->1 head used on the VPU as a row vector, kept f32
        "wf2": p["wf2"].reshape(1, 32),                            # (1, 32)
    }
    return kp


def scoreformer_wrapper_apply(params, kernel_params, user_indices, item_indices):
    # glue: embedding gathers (bf16 tables) + bias assembly in plain JAX
    user_emb = kernel_params["user_emb_table_bf16"][user_indices]   # (B, 256) bf16
    item_emb = kernel_params["item_emb_table_bf16"][item_indices]   # (B, 256) bf16
    user_b = params["user_bias_table"][user_indices][:, 0]          # (B,)
    item_b = params["item_bias_table"][item_indices][:, 0]          # (B,)
    global_b = jnp.broadcast_to(params["global_bias"], user_indices.shape)
    # fold the final-layer output bias (bf2) into the per-row bias term
    bias_plus = (global_b + user_b + item_b)[:, None] + params["bf2"]   # (B, 1)
    return scoreformer_forward(user_emb, item_emb, bias_plus, kernel_params)


scoreformer_wrapper_apply_jit = jax.jit(scoreformer_wrapper_apply)


if __name__ == "__main__":
    num_users, num_items, batch = 50, 40, 8
    key = jax.random.PRNGKey(0)
    k_params, k_u, k_i = jax.random.split(key, 3)

    params = init_params(k_params, num_users, num_items)
    kernel_params = fuse_params(params)
    user_indices = jax.random.randint(k_u, (batch,), 0, num_users, dtype=jnp.int32)
    item_indices = jax.random.randint(k_i, (batch,), 0, num_items, dtype=jnp.int32)

    out = scoreformer_wrapper_apply_jit(params, kernel_params, user_indices, item_indices)
    out = jax.block_until_ready(out)
    assert out.shape == (batch, 1) and out.dtype == jnp.float32
    print("KERNEL_OK")
</pallas_src>

<mosaic_0001>
module attributes {stable_mosaic.version = 11 : i64} {
  func.func @_fallback_kernel(%arg0: i32, %arg1: memref<8x256xbf16, #tpu.memory_space<vmem>>, %arg2: memref<8x256xbf16, #tpu.memory_space<vmem>>, %arg3: memref<8x1xf32, #tpu.memory_space<vmem>>, %arg4: memref<256x512xbf16, #tpu.memory_space<vmem>>, %arg5: memref<256x512xbf16, #tpu.memory_space<vmem>>, %arg6: memref<1x512xf32, #tpu.memory_space<vmem>>, %arg7: memref<512x256xbf16, #tpu.memory_space<vmem>>, %arg8: memref<1x256xf32, #tpu.memory_space<vmem>>, %arg9: memref<256x128xbf16, #tpu.memory_space<vmem>>, %arg10: memref<1x128xf32, #tpu.memory_space<vmem>>, %arg11: memref<128x64xbf16, #tpu.memory_space<vmem>>, %arg12: memref<1x64xf32, #tpu.memory_space<vmem>>, %arg13: memref<256x32xbf16, #tpu.memory_space<vmem>>, %arg14: memref<256x32xbf16, #tpu.memory_space<vmem>>, %arg15: memref<256x32xbf16, #tpu.memory_space<vmem>>, %arg16: memref<64x32xbf16, #tpu.memory_space<vmem>>, %arg17: memref<1x32xf32, #tpu.memory_space<vmem>>, %arg18: memref<1x32xf32, #tpu.memory_space<vmem>>, %arg19: memref<8x1xf32, #tpu.memory_space<vmem>>) attributes {dimension_semantics = [#tpu.dimension_semantics<parallel>], iteration_bounds = array<i64: 2>, scalar_prefetch = 0 : i64, scratch_operands = 0 : i64, tpu.core_type = #tpu.core_type<tc>, window_params = [{transform_indices = @transform_0, window_bounds = array<i64: 8, 256>}, {transform_indices = @transform_1, window_bounds = array<i64: 8, 256>}, {transform_indices = @transform_2, window_bounds = array<i64: 8, 1>}, {pipeline_mode = #tpu.pipeline_mode<synchronous>, transform_indices = @transform_3, window_bounds = array<i64: 256, 512>}, {pipeline_mode = #tpu.pipeline_mode<synchronous>, transform_indices = @transform_4, window_bounds = array<i64: 256, 512>}, {pipeline_mode = #tpu.pipeline_mode<synchronous>, transform_indices = @transform_5, window_bounds = array<i64: 1, 512>}, {pipeline_mode = #tpu.pipeline_mode<synchronous>, transform_indices = @transform_6, window_bounds = array<i64: 512, 256>}, {pipeline_mode = #tpu.pipeline_mode<synchronous>, transform_indices = @transform_7, window_bounds = array<i64: 1, 256>}, {pipeline_mode = #tpu.pipeline_mode<synchronous>, transform_indices = @transform_8, window_bounds = array<i64: 256, 128>}, {pipeline_mode = #tpu.pipeline_mode<synchronous>, transform_indices = @transform_9, window_bounds = array<i64: 1, 128>}, {pipeline_mode = #tpu.pipeline_mode<synchronous>, transform_indices = @transform_10, window_bounds = array<i64: 128, 64>}, {pipeline_mode = #tpu.pipeline_mode<synchronous>, transform_indices = @transform_11, window_bounds = array<i64: 1, 64>}, {pipeline_mode = #tpu.pipeline_mode<synchronous>, transform_indices = @transform_12, window_bounds = array<i64: 256, 32>}, {pipeline_mode = #tpu.pipeline_mode<synchronous>, transform_indices = @transform_13, window_bounds = array<i64: 256, 32>}, {pipeline_mode = #tpu.pipeline_mode<synchronous>, transform_indices = @transform_14, window_bounds = array<i64: 256, 32>}, {pipeline_mode = #tpu.pipeline_mode<synchronous>, transform_indices = @transform_15, window_bounds = array<i64: 64, 32>}, {pipeline_mode = #tpu.pipeline_mode<synchronous>, transform_indices = @transform_16, window_bounds = array<i64: 1, 32>}, {pipeline_mode = #tpu.pipeline_mode<synchronous>, transform_indices = @transform_17, window_bounds = array<i64: 1, 32>}, {transform_indices = @transform_18, window_bounds = array<i64: 8, 1>}]} {
    %c0 = arith.constant 0 : index
    %c0_0 = arith.constant 0 : index
    %0 = vector.load %arg1[%c0, %c0_0] : memref<8x256xbf16, #tpu.memory_space<vmem>>, vector<8x256xbf16>
    %c0_1 = arith.constant 0 : index
    %c0_2 = arith.constant 0 : index
    %1 = vector.load %arg2[%c0_1, %c0_2] : memref<8x256xbf16, #tpu.memory_space<vmem>>, vector<8x256xbf16>
    %2 = arith.mulf %0, %1 : vector<8x256xbf16>
    %c0_3 = arith.constant 0 : index
    %c0_4 = arith.constant 0 : index
    %3 = vector.load %arg4[%c0_3, %c0_4] : memref<256x512xbf16, #tpu.memory_space<vmem>>, vector<256x512xbf16>
    %cst = arith.constant dense<0.000000e+00> : vector<8x512xf32>
    %4 = tpu.matmul %0, %3, %cst {dimension_numbers = #tpu.dot_dimension_numbers<[1], [0], [0], [1], [0, 0, 1, 1], [], []>} : vector<8x256xbf16>, vector<256x512xbf16>, vector<8x512xf32> -> vector<8x512xf32>
    %c0_5 = arith.constant 0 : index
    %c0_6 = arith.constant 0 : index
    %5 = vector.load %arg5[%c0_5, %c0_6] : memref<256x512xbf16, #tpu.memory_space<vmem>>, vector<256x512xbf16>
    %cst_7 = arith.constant dense<0.000000e+00> : vector<8x512xf32>
    %6 = tpu.matmul %1, %5, %cst_7 {dimension_numbers = #tpu.dot_dimension_numbers<[1], [0], [0], [1], [0, 0, 1, 1], [], []>} : vector<8x256xbf16>, vector<256x512xbf16>, vector<8x512xf32> -> vector<8x512xf32>
    %7 = arith.addf %4, %6 : vector<8x512xf32>
    %c0_8 = arith.constant 0 : index
    %c0_9 = arith.constant 0 : index
    %8 = vector.load %arg6[%c0_8, %c0_9] : memref<1x512xf32, #tpu.memory_space<vmem>>, vector<1x512xf32>
    %9 = vector.broadcast %8 : vector<1x512xf32> to vector<8x512xf32>
    %10 = arith.addf %7, %9 : vector<8x512xf32>
    %cst_10 = arith.constant 0.000000e+00 : f32
    %11 = vector.broadcast %cst_10 : f32 to vector<8x512xf32>
    %12 = arith.maximumf %10, %11 : vector<8x512xf32>
    %13 = arith.truncf %12 : vector<8x512xf32> to vector<8x512xbf16>
    %c0_11 = arith.constant 0 : index
    %c0_12 = arith.constant 0 : index
    %14 = vector.load %arg7[%c0_11, %c0_12] : memref<512x256xbf16, #tpu.memory_space<vmem>>, vector<512x256xbf16>
    %cst_13 = arith.constant dense<0.000000e+00> : vector<8x256xf32>
    %15 = tpu.matmul %13, %14, %cst_13 {dimension_numbers = #tpu.dot_dimension_numbers<[1], [0], [0], [1], [0, 0, 1, 1], [], []>} : vector<8x512xbf16>, vector<512x256xbf16>, vector<8x256xf32> -> vector<8x256xf32>
    %c0_14 = arith.constant 0 : index
    %c0_15 = arith.constant 0 : index
    %16 = vector.load %arg8[%c0_14, %c0_15] : memref<1x256xf32, #tpu.memory_space<vmem>>, vector<1x256xf32>
    %17 = vector.broadcast %16 : vector<1x256xf32> to vector<8x256xf32>
    %18 = arith.addf %15, %17 : vector<8x256xf32>
    %cst_16 = arith.constant 0.000000e+00 : f32
    %19 = vector.broadcast %cst_16 : f32 to vector<8x256xf32>
    %20 = arith.maximumf %18, %19 : vector<8x256xf32>
    %21 = arith.truncf %20 : vector<8x256xf32> to vector<8x256xbf16>
    %c0_17 = arith.constant 0 : index
    %c0_18 = arith.constant 0 : index
    %22 = vector.load %arg9[%c0_17, %c0_18] : memref<256x128xbf16, #tpu.memory_space<vmem>>, vector<256x128xbf16>
    %cst_19 = arith.constant dense<0.000000e+00> : vector<8x128xf32>
    %23 = tpu.matmul %21, %22, %cst_19 {dimension_numbers = #tpu.dot_dimension_numbers<[1], [0], [0], [1], [0, 0, 1, 1], [], []>} : vector<8x256xbf16>, vector<256x128xbf16>, vector<8x128xf32> -> vector<8x128xf32>
    %c0_20 = arith.constant 0 : index
    %c0_21 = arith.constant 0 : index
    %24 = vector.load %arg10[%c0_20, %c0_21] : memref<1x128xf32, #tpu.memory_space<vmem>>, vector<1x128xf32>
    %25 = vector.broadcast %24 : vector<1x128xf32> to vector<8x128xf32>
    %26 = arith.addf %23, %25 : vector<8x128xf32>
    %cst_22 = arith.constant 0.000000e+00 : f32
    %27 = vector.broadcast %cst_22 : f32 to vector<8x128xf32>
    %28 = arith.maximumf %26, %27 : vector<8x128xf32>
    %29 = arith.truncf %28 : vector<8x128xf32> to vector<8x128xbf16>
    %c0_23 = arith.constant 0 : index
    %c0_24 = arith.constant 0 : index
    %30 = vector.load %arg11[%c0_23, %c0_24] : memref<128x64xbf16, #tpu.memory_space<vmem>>, vector<128x64xbf16>
    %cst_25 = arith.constant dense<0.000000e+00> : vector<8x64xf32>
    %31 = tpu.matmul %29, %30, %cst_25 {dimension_numbers = #tpu.dot_dimension_numbers<[1], [0], [0], [1], [0, 0, 1, 1], [], []>} : vector<8x128xbf16>, vector<128x64xbf16>, vector<8x64xf32> -> vector<8x64xf32>
    %c0_26 = arith.constant 0 : index
    %c0_27 = arith.constant 0 : index
    %32 = vector.load %arg12[%c0_26, %c0_27] : memref<1x64xf32, #tpu.memory_space<vmem>>, vector<1x64xf32>
    %33 = vector.broadcast %32 : vector<1x64xf32> to vector<8x64xf32>
    %34 = arith.addf %31, %33 : vector<8x64xf32>
    %cst_28 = arith.constant 0.000000e+00 : f32
    %35 = vector.broadcast %cst_28 : f32 to vector<8x64xf32>
    %36 = arith.maximumf %34, %35 : vector<8x64xf32>
    %c0_29 = arith.constant 0 : index
    %c0_30 = arith.constant 0 : index
    %37 = vector.load %arg13[%c0_29, %c0_30] : memref<256x32xbf16, #tpu.memory_space<vmem>>, vector<256x32xbf16>
    %cst_31 = arith.constant dense<0.000000e+00> : vector<8x32xf32>
    %38 = tpu.matmul %2, %37, %cst_31 {dimension_numbers = #tpu.dot_dimension_numbers<[1], [0], [0], [1], [0, 0, 1, 1], [], []>} : vector<8x256xbf16>, vector<256x32xbf16>, vector<8x32xf32> -> vector<8x32xf32>
    %c0_32 = arith.constant 0 : index
    %c0_33 = arith.constant 0 : index
    %39 = vector.load %arg14[%c0_32, %c0_33] : memref<256x32xbf16, #tpu.memory_space<vmem>>, vector<256x32xbf16>
    %cst_34 = arith.constant dense<0.000000e+00> : vector<8x32xf32>
    %40 = tpu.matmul %0, %39, %cst_34 {dimension_numbers = #tpu.dot_dimension_numbers<[1], [0], [0], [1], [0, 0, 1, 1], [], []>} : vector<8x256xbf16>, vector<256x32xbf16>, vector<8x32xf32> -> vector<8x32xf32>
    %41 = arith.addf %38, %40 : vector<8x32xf32>
    %c0_35 = arith.constant 0 : index
    %c0_36 = arith.constant 0 : index
    %42 = vector.load %arg15[%c0_35, %c0_36] : memref<256x32xbf16, #tpu.memory_space<vmem>>, vector<256x32xbf16>
    %cst_37 = arith.constant dense<0.000000e+00> : vector<8x32xf32>
    %43 = tpu.matmul %1, %42, %cst_37 {dimension_numbers = #tpu.dot_dimension_numbers<[1], [0], [0], [1], [0, 0, 1, 1], [], []>} : vector<8x256xbf16>, vector<256x32xbf16>, vector<8x32xf32> -> vector<8x32xf32>
    %44 = arith.addf %41, %43 : vector<8x32xf32>
    %45 = arith.truncf %36 : vector<8x64xf32> to vector<8x64xbf16>
    %c0_38 = arith.constant 0 : index
    %c0_39 = arith.constant 0 : index
    %46 = vector.load %arg16[%c0_38, %c0_39] : memref<64x32xbf16, #tpu.memory_space<vmem>>, vector<64x32xbf16>
    %cst_40 = arith.constant dense<0.000000e+00> : vector<8x32xf32>
    %47 = tpu.matmul %45, %46, %cst_40 {dimension_numbers = #tpu.dot_dimension_numbers<[1], [0], [0], [1], [0, 0, 1, 1], [], []>} : vector<8x64xbf16>, vector<64x32xbf16>, vector<8x32xf32> -> vector<8x32xf32>
    %48 = arith.addf %44, %47 : vector<8x32xf32>
    %c0_41 = arith.constant 0 : index
    %c0_42 = arith.constant 0 : index
    %49 = vector.load %arg17[%c0_41, %c0_42] : memref<1x32xf32, #tpu.memory_space<vmem>>, vector<1x32xf32>
    %50 = vector.broadcast %49 : vector<1x32xf32> to vector<8x32xf32>
    %51 = arith.addf %48, %50 : vector<8x32xf32>
    %cst_43 = arith.constant 0.000000e+00 : f32
    %52 = vector.broadcast %cst_43 : f32 to vector<8x32xf32>
    %53 = arith.maximumf %51, %52 : vector<8x32xf32>
    %c0_44 = arith.constant 0 : index
    %c0_45 = arith.constant 0 : index
    %54 = vector.load %arg18[%c0_44, %c0_45] : memref<1x32xf32, #tpu.memory_space<vmem>>, vector<1x32xf32>
    %55 = vector.broadcast %54 : vector<1x32xf32> to vector<8x32xf32>
    %56 = arith.mulf %53, %55 : vector<8x32xf32>
    %cst_46 = arith.constant dense<0.000000e+00> : vector<8xf32>
    %57 = vector.multi_reduction <add>, %56, %cst_46 [1] : vector<8x32xf32> to vector<8xf32>
    %58 = vector.shape_cast %57 : vector<8xf32> to vector<8x1xf32>
    %c0_47 = arith.constant 0 : index
    %c0_48 = arith.constant 0 : index
    %59 = vector.load %arg3[%c0_47, %c0_48] : memref<8x1xf32, #tpu.memory_space<vmem>>, vector<8x1xf32>
    %60 = arith.addf %58, %59 : vector<8x1xf32>
    %c0_49 = arith.constant 0 : index
    %c0_50 = arith.constant 0 : index
    %61 = vector.load %arg19[%c0_49, %c0_50] : memref<8x1xf32, #tpu.memory_space<vmem>>, vector<8x1xf32>
    tpu.vector_store %arg19[%c0_49, %c0_50], %60 {strides = array<i32>} : memref<8x1xf32, #tpu.memory_space<vmem>>, vector<8x1xf32>,
    return
  }
  func.func @transform_0(%arg0: i32) -> (i32, i32) {
    %c0_i32 = arith.constant 0 : i32
    %c0_i32_0 = arith.constant 0 : i32
    return %arg0, %c0_i32 : i32, i32
  }
  func.func @transform_1(%arg0: i32) -> (i32, i32) {
    %c0_i32 = arith.constant 0 : i32
    %c0_i32_0 = arith.constant 0 : i32
    return %arg0, %c0_i32 : i32, i32
  }
  func.func @transform_2(%arg0: i32) -> (i32, i32) {
    %c0_i32 = arith.constant 0 : i32
    %c0_i32_0 = arith.constant 0 : i32
    return %arg0, %c0_i32 : i32, i32
  }
  func.func @transform_3(%arg0: i32) -> (i32, i32) {
    %c0_i32 = arith.constant 0 : i32
    %c0_i32_0 = arith.constant 0 : i32
    %c0_i32_1 = arith.constant 0 : i32
    return %c0_i32, %c0_i32_0 : i32, i32
  }
  func.func @transform_4(%arg0: i32) -> (i32, i32) {
    %c0_i32 = arith.constant 0 : i32
    %c0_i32_0 = arith.constant 0 : i32
    %c0_i32_1 = arith.constant 0 : i32
    return %c0_i32, %c0_i32_0 : i32, i32
  }
  func.func @transform_5(%arg0: i32) -> (i32, i32) {
    %c0_i32 = arith.constant 0 : i32
    %c0_i32_0 = arith.constant 0 : i32
    %c0_i32_1 = arith.constant 0 : i32
    return %c0_i32, %c0_i32_0 : i32, i32
  }
  func.func @transform_6(%arg0: i32) -> (i32, i32) {
    %c0_i32 = arith.constant 0 : i32
    %c0_i32_0 = arith.constant 0 : i32
    %c0_i32_1 = arith.constant 0 : i32
    return %c0_i32, %c0_i32_0 : i32, i32
  }
  func.func @transform_7(%arg0: i32) -> (i32, i32) {
    %c0_i32 = arith.constant 0 : i32
    %c0_i32_0 = arith.constant 0 : i32
    %c0_i32_1 = arith.constant 0 : i32
    return %c0_i32, %c0_i32_0 : i32, i32
  }
  func.func @transform_8(%arg0: i32) -> (i32, i32) {
    %c0_i32 = arith.constant 0 : i32
    %c0_i32_0 = arith.constant 0 : i32
    %c0_i32_1 = arith.constant 0 : i32
    return %c0_i32, %c0_i32_0 : i32, i32
  }
  func.func @transform_9(%arg0: i32) -> (i32, i32) {
    %c0_i32 = arith.constant 0 : i32
    %c0_i32_0 = arith.constant 0 : i32
    %c0_i32_1 = arith.constant 0 : i32
    return %c0_i32, %c0_i32_0 : i32, i32
  }
  func.func @transform_10(%arg0: i32) -> (i32, i32) {
    %c0_i32 = arith.constant 0 : i32
    %c0_i32_0 = arith.constant 0 : i32
    %c0_i32_1 = arith.constant 0 : i32
    return %c0_i32, %c0_i32_0 : i32, i32
  }
  func.func @transform_11(%arg0: i32) -> (i32, i32) {
    %c0_i32 = arith.constant 0 : i32
    %c0_i32_0 = arith.constant 0 : i32
    %c0_i32_1 = arith.constant 0 : i32
    return %c0_i32, %c0_i32_0 : i32, i32
  }
  func.func @transform_12(%arg0: i32) -> (i32, i32) {
    %c0_i32 = arith.constant 0 : i32
    %c0_i32_0 = arith.constant 0 : i32
    %c0_i32_1 = arith.constant 0 : i32
    return %c0_i32, %c0_i32_0 : i32, i32
  }
  func.func @transform_13(%arg0: i32) -> (i32, i32) {
    %c0_i32 = arith.constant 0 : i32
    %c0_i32_0 = arith.constant 0 : i32
    %c0_i32_1 = arith.constant 0 : i32
    return %c0_i32, %c0_i32_0 : i32, i32
  }
  func.func @transform_14(%arg0: i32) -> (i32, i32) {
    %c0_i32 = arith.constant 0 : i32
    %c0_i32_0 = arith.constant 0 : i32
    %c0_i32_1 = arith.constant 0 : i32
    return %c0_i32, %c0_i32_0 : i32, i32
  }
  func.func @transform_15(%arg0: i32) -> (i32, i32) {
    %c0_i32 = arith.constant 0 : i32
    %c0_i32_0 = arith.constant 0 : i32
    %c0_i32_1 = arith.constant 0 : i32
    return %c0_i32, %c0_i32_0 : i32, i32
  }
  func.func @transform_16(%arg0: i32) -> (i32, i32) {
    %c0_i32 = arith.constant 0 : i32
    %c0_i32_0 = arith.constant 0 : i32
    %c0_i32_1 = arith.constant 0 : i32
    return %c0_i32, %c0_i32_0 : i32, i32
  }
  func.func @transform_17(%arg0: i32) -> (i32, i32) {
    %c0_i32 = arith.constant 0 : i32
    %c0_i32_0 = arith.constant 0 : i32
    %c0_i32_1 = arith.constant 0 : i32
    return %c0_i32, %c0_i32_0 : i32, i32
  }
  func.func @transform_18(%arg0: i32) -> (i32, i32) {
    %c0_i32 = arith.constant 0 : i32
    %c0_i32_0 = arith.constant 0 : i32
    return %arg0, %c0_i32 : i32, i32
  }
}

</mosaic_0001>

<bundles_post_ra>
// kernel: scoreformer_wrapper_apply.1
= control target key start
LH: loop header
LB: loop body
LE: loop exit
PB: predicated region body
PF: predicated region fallthrough
CT: control target
= control target key end

     0   :  { %s4457_s27 = smov 0   ;;  %s5954_s0 = inlined_call_operand.vmem [shape: bf16[16,256], index: 0, kind: input, shape index: {}]   ;;  %s5955_s1 = inlined_call_operand.vmem [shape: bf16[16,256], index: 1, kind: input, shape index: {}]   ;;  %s5956_s2 = inlined_call_operand.vmem [shape: f32[16,1], index: 2, kind: input, shape index: {}]   ;;  %s5957_s3 = inlined_call_operand.vmem [shape: bf16[256,512], index: 3, kind: input, shape index: {}]   ;;  %s5958_s4 = inlined_call_operand.vmem [shape: bf16[256,512], index: 4, kind: input, shape index: {}]   ;;  %s5959_s5 = inlined_call_operand.vmem [shape: f32[1,512], index: 5, kind: input, shape index: {}]   ;;  %s5960_s6 = inlined_call_operand.vmem [shape: bf16[512,256], index: 6, kind: input, shape index: {}]   ;;  %s5961_s7 = inlined_call_operand.vmem [shape: f32[1,256], index: 7, kind: input, shape index: {}]   ;;  %s5962_s8 = inlined_call_operand.vmem [shape: bf16[256,128], index: 8, kind: input, shape index: {}]   ;;  %s5963_s9 = inlined_call_operand.vmem [shape: f32[1,128], index: 9, kind: input, shape index: {}]   ;;  %s5964_s10 = inlined_call_operand.vmem [shape: bf16[128,64], index: 10, kind: input, shape index: {}]   ;;  %s5965_s11 = inlined_call_operand.vmem [shape: f32[1,64], index: 11, kind: input, shape index: {}]   ;;  %s5966_s12 = inlined_call_operand.vmem [shape: bf16[256,32], index: 12, kind: input, shape index: {}]   ;;  %s5967_s13 = inlined_call_operand.vmem [shape: bf16[256,32], index: 13, kind: input, shape index: {}]   ;;  %s5968_s14 = inlined_call_operand.vmem [shape: bf16[256,32], index: 14, kind: input, shape index: {}]   ;;  %s5969_s15 = inlined_call_operand.vmem [shape: bf16[64,32], index: 15, kind: input, shape index: {}]   ;;  %s5970_s16 = inlined_call_operand.vmem [shape: f32[1,32], index: 16, kind: input, shape index: {}]   ;;  %s5971_s17 = inlined_call_operand.vmem [shape: f32[1,32], index: 17, kind: input, shape index: {}]   ;;  %s5972_s18 = inlined_call_operand.vmem [shape: f32[16,1], index: 18, kind: output, shape index: {}]  }
   0x1   :  { %5973 = sst [smem:[#allocation2_spill]] %s5954_s0 }
   0x2   :  { %5974 = sst [smem:[#allocation3_spill]] %s5955_s1 }
   0x3   :  { %5975 = sst [smem:[#allocation4_spill]] %s5956_s2 }
   0x4   :  { %5976 = sst [smem:[#allocation5_spill]] %s5958_s4 }
   0x5 LB: > { %s2984_s28 = sadd.s32 4294967295, %s4360_s27   ;;  %p2988_p0 = scmp.ge.s32.totalorder %s4360_s27, 1  ;;  %s4360_s27 = sphi %s4457_s27, %s28_s27  }
   0x6   : > { %p531_p1 = scmp.lt.s32.totalorder %s4360_s27, 3 }
   0x8   : > { %p532_p2 = pnand %p2988_p0, %p531_p1 }
   0x9   : > { %s5977_s4 = sld [smem:[#allocation5_spill]] (!%p532_p2)  ;;  %p593_p3 = scmp.lt.s32.totalorder (!%p532_p2), %s2984_s28, 1 }
   0xa   : > { %535 = sbr.rel (%p532_p2) target bundleno = 966 (0x3c6), region = 92  ;;  %s5978_s22 = sld [smem:[#allocation3_spill]] (!%p532_p2) }
   0xb   : > { %s5979_s25 = sld [smem:[#allocation2_spill]] (!%p532_p2) }
   0xf   : > { %v3109_v0 = vld [vmem:[%s5977_s4 + $0xe0] sm:$0xf]  ;;  %v4166_v1 = vld [vmem:[%s5977_s4 + $0xec] sm:$0xf0]  ;;  %v4164_v5 = vld [vmem:[%s5977_s4 + $0xe4] sm:$0xf] }
  0x10   : > { %v3237_v2 = vld [vmem:[%s5977_s4 + $0x1e0] sm:$0xf]  ;;  %v3110_v3 = vor.u32 %v4166_v1, %v3109_v0  ;;  %v4198_v4 = vld [vmem:[%s5977_s4 + $0x1ec] sm:$0xf0]  ;;  %v3111_v6 = vld [vmem:[%s5977_s4 + $0xf0] sm:$0xf0] }
  0x11   : > { %v3238_v7 = vor.u32 %v4198_v4, %v3237_v2  ;;  %v3114_v8 = vor.u32 %v4164_v5, %v3111_v6  ;;  %v4196_v9 = vld [vmem:[%s5977_s4 + $0x1e4] sm:$0xf]  ;;  %v3239_v10 = vld [vmem:[%s5977_s4 + $0x1f0] sm:$0xf0]  ;;  %v3093_v11 = vld [vmem:[%s5977_s4 + $0xc0] sm:$0xf] }
  0x12   : > { %1077 = vmatpush.bf16.msra.mxu0 %v3110_v3  ;;  %v3242_v12 = vor.u32 %v4196_v9, %v3239_v10  ;;  %v4162_v13 = vld [vmem:[%s5977_s4 + $0xcc] sm:$0xf0]  ;;  %v3221_v14 = vld [vmem:[%s5977_s4 + $0x1c0] sm:$0xf]  ;;  %v4160_v18 = vld [vmem:[%s5977_s4 + $0xc4] sm:$0xf] }
  0x13   : > { %v4194_v15 = vld [vmem:[%s5977_s4 + $0x1cc] sm:$0xf0]  ;;  %1090 = vmatpush.bf16.msra.mxu1 %v3238_v7  ;;  %1103 = vmatpush.bf16.msra.mxu2 %v3114_v8  ;;  %v3094_v16 = vor.u32 %v4162_v13, %v3093_v11  ;;  %v3095_v19 = vld [vmem:[%s5977_s4 + $0xd0] sm:$0xf0]  ;;  %v4192_v20 = vld [vmem:[%s5977_s4 + $0x1c4] sm:$0xf] }
  0x14   : > { %v3222_v17 = vor.u32 %v4194_v15, %v3221_v14  ;;  %1116 = vmatpush.bf16.msra.mxu3 %v3242_v12  ;;  %v3098_v21 = vor.u32 %v4160_v18, %v3095_v19  ;;  %v3223_v22 = vld [vmem:[%s5977_s4 + $0x1d0] sm:$0xf0]  ;;  %v3077_v23 = vld [vmem:[%s5977_s4 + $0xa0] sm:$0xf]  ;;  %v4158_v24 = vld [vmem:[%s5977_s4 + $0xac] sm:$0xf0] }
  0x15   : > { %v3226_v25 = vor.u32 %v4192_v20, %v3223_v22  ;;  %v3205_v26 = vld [vmem:[%s5977_s4 + $0x1a0] sm:$0xf]  ;;  %v4190_v27 = vld [vmem:[%s5977_s4 + $0x1ac] sm:$0xf0]  ;;  %v4156_v28 = vld [vmem:[%s5977_s4 + $0xa4] sm:$0xf]  ;;  %v3078_v29 = vor.u32 %v4158_v24, %v3077_v23 }
  0x16   : > { %1078 = vmatpush.bf16.msra.mxu0 %v3094_v16  ;;  %v3079_v30 = vld [vmem:[%s5977_s4 + $0xb0] sm:$0xf0]  ;;  %v4188_v31 = vld [vmem:[%s5977_s4 + $0x1a4] sm:$0xf]  ;;  %v3206_v33 = vor.u32 %v4190_v27, %v3205_v26  ;;  %v3061_v35 = vld [vmem:[%s5977_s4 + $0x80] sm:$0xf] }
  0x17   : > { %v3207_v32 = vld [vmem:[%s5977_s4 + $0x1b0] sm:$0xf0]  ;;  %1091 = vmatpush.bf16.msra.mxu1 %v3222_v17  ;;  %1104 = vmatpush.bf16.msra.mxu2 %v3098_v21  ;;  %v3082_v34 = vor.u32 %v4156_v28, %v3079_v30  ;;  %v4154_v36 = vld [vmem:[%s5977_s4 + $0x8c] sm:$0xf0]  ;;  %v3189_v37 = vld [vmem:[%s5977_s4 + $0x180] sm:$0xf] }
  0x18   : > { %1117 = vmatpush.bf16.msra.mxu3 %v3226_v25  ;;  %v3210_v38 = vor.u32 %v4188_v31, %v3207_v32  ;;  %v4186_v39 = vld [vmem:[%s5977_s4 + $0x18c] sm:$0xf0]  ;;  %v4152_v40 = vld [vmem:[%s5977_s4 + $0x84] sm:$0xf]  ;;  %v3063_v41 = vld [vmem:[%s5977_s4 + $0x90] sm:$0xf0]  ;;  %v3062_v44 = vor.u32 %v4154_v36, %v3061_v35 }
  0x19   : > { %v4184_v42 = vld [vmem:[%s5977_s4 + $0x184] sm:$0xf]  ;;  %v3191_v43 = vld [vmem:[%s5977_s4 + $0x190] sm:$0xf0]  ;;  %v3190_v45 = vor.u32 %v4186_v39, %v3189_v37  ;;  %v3066_v46 = vor.u32 %v4152_v40, %v3063_v41  ;;  %v3045_v47 = vld [vmem:[%s5977_s4 + $0x60] sm:$0xf] }
  0x1a   : > { %1079 = vmatpush.bf16.msra.mxu0 %v3078_v29  ;;  %v4150_v48 = vld [vmem:[%s5977_s4 + $0x6c] sm:$0xf0]  ;;  %v3173_v49 = vld [vmem:[%s5977_s4 + $0x160] sm:$0xf]  ;;  %v3194_v50 = vor.u32 %v4184_v42, %v3191_v43  ;;  %v4148_v52 = vld [vmem:[%s5977_s4 + $0x64] sm:$0xf] }
  0x1b   : > { %1092 = vmatpush.bf16.msra.mxu1 %v3206_v33  ;;  %1105 = vmatpush.bf16.msra.mxu2 %v3082_v34  ;;  %v4182_v51 = vld [vmem:[%s5977_s4 + $0x16c] sm:$0xf0]  ;;  %v3047_v53 = vld [vmem:[%s5977_s4 + $0x70] sm:$0xf0]  ;;  %v4180_v54 = vld [vmem:[%s5977_s4 + $0x164] sm:$0xf]  ;;  %v3046_v56 = vor.u32 %v4150_v48, %v3045_v47 }
  0x1c   : > { %1118 = vmatpush.bf16.msra.mxu3 %v3210_v38  ;;  %v3175_v55 = vld [vmem:[%s5977_s4 + $0x170] sm:$0xf0]  ;;  %v3174_v57 = vor.u32 %v4182_v51, %v3173_v49  ;;  %v3050_v58 = vor.u32 %v4148_v52, %v3047_v53  ;;  %v3029_v59 = vld [vmem:[%s5977_s4 + $0x40] sm:$0xf]  ;;  %v4146_v60 = vld [vmem:[%s5977_s4 + $0x4c] sm:$0xf0] }
  0x1d   : > { %v3157_v61 = vld [vmem:[%s5977_s4 + $0x140] sm:$0xf]  ;;  %v3178_v62 = vor.u32 %v4180_v54, %v3175_v55  ;;  %v4178_v63 = vld [vmem:[%s5977_s4 + $0x14c] sm:$0xf0]  ;;  %v4144_v0 = vld [vmem:[%s5977_s4 + $0x44] sm:$0xf]  ;;  %v3030_v4 = vor.u32 %v4146_v60, %v3029_v59 }
  0x1e   : > { %1080 = vmatpush.bf16.msra.mxu0 %v3062_v44  ;;  %v3031_v1 = vld [vmem:[%s5977_s4 + $0x50] sm:$0xf0]  ;;  %v4176_v2 = vld [vmem:[%s5977_s4 + $0x144] sm:$0xf]  ;;  %v3158_v5 = vor.u32 %v4178_v63, %v3157_v61  ;;  %v3013_v7 = vld [vmem:[%s5977_s4 + $0x20] sm:$0xf] }
  0x1f   : > { %1093 = vmatpush.bf16.msra.mxu1 %v3190_v45  ;;  %1106 = vmatpush.bf16.msra.mxu2 %v3066_v46  ;;  %v3159_v3 = vld [vmem:[%s5977_s4 + $0x150] sm:$0xf0]  ;;  %v3034_v6 = vor.u32 %v4144_v0, %v3031_v1  ;;  %v4142_v8 = vld [vmem:[%s5977_s4 + $0x2c] sm:$0xf0]  ;;  %v3141_v9 = vld [vmem:[%s5977_s4 + $0x120] sm:$0xf] }
  0x20   : > { %1119 = vmatpush.bf16.msra.mxu3 %v3194_v50  ;;  %v3162_v10 = vor.u32 %v4176_v2, %v3159_v3  ;;  %v4174_v11 = vld [vmem:[%s5977_s4 + $0x12c] sm:$0xf0]  ;;  %v4140_v12 = vld [vmem:[%s5977_s4 + $0x24] sm:$0xf]  ;;  %v3015_v13 = vld [vmem:[%s5977_s4 + $0x30] sm:$0xf0]  ;;  %v3014_v16 = vor.u32 %v4142_v8, %v3013_v7 }
  0x21   : > { %v4172_v14 = vld [vmem:[%s5977_s4 + $0x124] sm:$0xf]  ;;  %v3143_v15 = vld [vmem:[%s5977_s4 + $0x130] sm:$0xf0]  ;;  %v2997_v17 = vld [vmem:[%s5977_s4] sm:$0xf]  ;;  %v3142_v19 = vor.u32 %v4174_v11, %v3141_v9  ;;  %v3018_v20 = vor.u32 %v4140_v12, %v3015_v13 }
  0x22   : > { %1081 = vmatpush.bf16.msra.mxu0 %v3046_v56  ;;  %v4138_v18 = vld [vmem:[%s5977_s4 + $0xc] sm:$0xf0]  ;;  %v3125_v21 = vld [vmem:[%s5977_s4 + $0x100] sm:$0xf]  ;;  %v4136_v23 = vld [vmem:[%s5977_s4 + $0x4] sm:$0xf]  ;;  %v3146_v24 = vor.u32 %v4172_v14, %v3143_v15 }
  0x23   : > { %1094 = vmatpush.bf16.msra.mxu1 %v3174_v57  ;;  %1107 = vmatpush.bf16.msra.mxu2 %v3050_v58  ;;  %v4170_v22 = vld [vmem:[%s5977_s4 + $0x10c] sm:$0xf0]  ;;  %v2999_v25 = vld [vmem:[%s5977_s4 + $0x10] sm:$0xf0]  ;;  %v4168_v26 = vld [vmem:[%s5977_s4 + $0x104] sm:$0xf]  ;;  %v2998_v31 = vor.u32 %v4138_v18, %v2997_v17 }
  0x24   : > { %1120 = vmatpush.bf16.msra.mxu3 %v3178_v62  ;;  %v3127_v27 = vld [vmem:[%s5977_s4 + $0x110] sm:$0xf0]  ;;  %v3117_v28 = vld [vmem:[%s5977_s4 + $0xe8] sm:$0xf]  ;;  %v4167_v29 = vld [vmem:[%s5977_s4 + $0xf4] sm:$0xf0]  ;;  %v3126_v35 = vor.u32 %v4170_v22, %v3125_v21  ;;  %v3002_v36 = vor.u32 %v4136_v23, %v2999_v25 }
  0x25   : > { %v3245_v30 = vld [vmem:[%s5977_s4 + $0x1e8] sm:$0xf]  ;;  %v4199_v32 = vld [vmem:[%s5977_s4 + $0x1f4] sm:$0xf0]  ;;  %v4165_v33 = vld [vmem:[%s5977_s4 + $0xec] sm:$0xf]  ;;  %v3130_v39 = vor.u32 %v4168_v26, %v3127_v27  ;;  %v3118_v40 = vor.u32 %v4167_v29, %v3117_v28 }
  0x26   : > { %1082 = vmatpush.bf16.msra.mxu0 %v3030_v4  ;;  %v3119_v34 = vld [vmem:[%s5977_s4 + $0xf8] sm:$0xf0]  ;;  %v4197_v37 = vld [vmem:[%s5977_s4 + $0x1ec] sm:$0xf]  ;;  %v3246_v41 = vor.u32 %v4199_v32, %v3245_v30  ;;  %v3101_v43 = vld [vmem:[%s5977_s4 + $0xc8] sm:$0xf] }
  0x27   : > { %1095 = vmatpush.bf16.msra.mxu1 %v3158_v5  ;;  %1108 = vmatpush.bf16.msra.mxu2 %v3034_v6  ;;  %v3247_v38 = vld [vmem:[%s5977_s4 + $0x1f8] sm:$0xf0]  ;;  %v3122_v42 = vor.u32 %v4165_v33, %v3119_v34  ;;  %v4163_v44 = vld [vmem:[%s5977_s4 + $0xd4] sm:$0xf0]  ;;  %v3229_v45 = vld [vmem:[%s5977_s4 + $0x1c8] sm:$0xf] }
  0x28   : > { %1121 = vmatpush.bf16.msra.mxu3 %v3162_v10  ;;  %v3250_v46 = vor.u32 %v4197_v37, %v3247_v38  ;;  %v4195_v47 = vld [vmem:[%s5977_s4 + $0x1d4] sm:$0xf0]  ;;  %v4161_v48 = vld [vmem:[%s5977_s4 + $0xcc] sm:$0xf]  ;;  %v3103_v49 = vld [vmem:[%s5977_s4 + $0xd8] sm:$0xf0]  ;;  %v3102_v52 = vor.u32 %v4163_v44, %v3101_v43 }
  0x29   : > { %v4193_v50 = vld [vmem:[%s5977_s4 + $0x1cc] sm:$0xf]  ;;  %v3231_v51 = vld [vmem:[%s5977_s4 + $0x1d8] sm:$0xf0]  ;;  %v3230_v53 = vor.u32 %v4195_v47, %v3229_v45  ;;  %v3106_v54 = vor.u32 %v4161_v48, %v3103_v49  ;;  %v3085_v55 = vld [vmem:[%s5977_s4 + $0xa8] sm:$0xf] }
  0x2a   : > { %1083 = vmatpush.bf16.msra.mxu0 %v3014_v16  ;;  %v4159_v56 = vld [vmem:[%s5977_s4 + $0xb4] sm:$0xf0]  ;;  %v3213_v57 = vld [vmem:[%s5977_s4 + $0x1a8] sm:$0xf]  ;;  %v3234_v58 = vor.u32 %v4193_v50, %v3231_v51  ;;  %v4157_v60 = vld [vmem:[%s5977_s4 + $0xac] sm:$0xf] }
  0x2b   : > { %1096 = vmatpush.bf16.msra.mxu1 %v3142_v19  ;;  %1109 = vmatpush.bf16.msra.mxu2 %v3018_v20  ;;  %v4191_v59 = vld [vmem:[%s5977_s4 + $0x1b4] sm:$0xf0]  ;;  %v3087_v61 = vld [vmem:[%s5977_s4 + $0xb8] sm:$0xf0]  ;;  %v4189_v62 = vld [vmem:[%s5977_s4 + $0x1ac] sm:$0xf]  ;;  %v3086_v0 = vor.u32 %v4159_v56, %v3085_v55 }
  0x2c   : > { %1122 = vmatpush.bf16.msra.mxu3 %v3146_v24  ;;  %v3215_v63 = vld [vmem:[%s5977_s4 + $0x1b8] sm:$0xf0]  ;;  %v3069_v1 = vld [vmem:[%s5977_s4 + $0x88] sm:$0xf]  ;;  %v3214_v2 = vor.u32 %v4191_v59, %v3213_v57  ;;  %v3090_v3 = vor.u32 %v4157_v60, %v3087_v61  ;;  %v4155_v4 = vld [vmem:[%s5977_s4 + $0x94] sm:$0xf0] }
  0x2d   : > { %v3197_v5 = vld [vmem:[%s5977_s4 + $0x188] sm:$0xf]  ;;  %v4187_v6 = vld [vmem:[%s5977_s4 + $0x194] sm:$0xf0]  ;;  %v3218_v7 = vor.u32 %v4189_v62, %v3215_v63  ;;  %v4153_v8 = vld [vmem:[%s5977_s4 + $0x8c] sm:$0xf]  ;;  %v3070_v12 = vor.u32 %v4155_v4, %v3069_v1 }
  0x2e   : > { %1084 = vmatpush.bf16.msra.mxu0 %v2998_v31  ;;  %v3071_v9 = vld [vmem:[%s5977_s4 + $0x98] sm:$0xf0]  ;;  %s5982_s28 = smov (!%p593_p3, %s2984_s28), 1  ;;  %v4185_v10 = vld [vmem:[%s5977_s4 + $0x18c] sm:$0xf]  ;;  %v3198_v14 = vor.u32 %v4187_v6, %v3197_v5  ;;  %vm2870_vm0 = vcmask 523264  }
  0x2f   : > { %1097 = vmatpush.bf16.msra.mxu1 %v3126_v35  ;;  %1110 = vmatpush.bf16.msra.mxu2 %v3002_v36  ;;  %v3199_v11 = vld [vmem:[%s5977_s4 + $0x198] sm:$0xf0]  ;;  %v3053_v13 = vld [vmem:[%s5977_s4 + $0x68] sm:$0xf]  ;;  %s4760_s26 = sshll.u32 %s5982_s28, 3  ;;  %v3074_v15 = vor.u32 %v4153_v8, %v3071_v9  ;;  %vm2899_vm1 = vcmask 261120  }
  0x30   : > { %1123 = vmatpush.bf16.msra.mxu3 %v3130_v39  ;;  %v4151_v16 = vld [vmem:[%s5977_s4 + $0x74] sm:$0xf0]  ;;  %v3181_v17 = vld [vmem:[%s5977_s4 + $0x168] sm:$0xf]  ;;  %s4775_s2 = scalar_lea.vmem %s5978_s22, %s4760_s26  ;;  %v3202_v19 = vor.u32 %v4185_v10, %v3199_v11  ;;  %v4149_v20 = vld [vmem:[%s5977_s4 + $0x6c] sm:$0xf]  ;;  %s5046_s29 = scalar_lea.vmem %s5979_s25, %s4760_s26 }
  0x31   : > { %v4183_v18 = vld [vmem:[%s5977_s4 + $0x174] sm:$0xf0]  ;;  %v3055_v21 = vld [vmem:[%s5977_s4 + $0x78] sm:$0xf0]  ;;  %v613_v22 = vld [vmem:[%s4775_s2] sm:$0xff]  ;;  %v3054_v27 = vor.u32 %v4151_v16, %v3053_v13  ;;  %s5980_s28 = sld [smem:[#allocation4_spill]]  ;;  %s610_s25 = scalar_lea.vmem %s5972_s18, %s4760_s26 }
  0x32   : > { %1129 = vmatpush.bf16.msrb.mxu0 %v3118_v40  ;;  %v4181_v23 = vld [vmem:[%s5977_s4 + $0x16c] sm:$0xf]  ;;  %v3183_v24 = vld [vmem:[%s5977_s4 + $0x178] sm:$0xf0]  ;;  %v751_v25 = vunpack.c.l.b16 %v613_v22  ;;  %v752_v26 = vunpack.c.h.b16 %v613_v22  ;;  %v3182_v28 = vor.u32 %v4183_v18, %v3181_v17  ;;  %v3058_v29 = vor.u32 %v4149_v20, %v3055_v21  ;;  %v3037_v30 = vld [vmem:[%s5977_s4 + $0x48] sm:$0xf] }
  0x33   : > { %1142 = vmatpush.bf16.msrb.mxu1 %v3246_v41  ;;  %1155 = vmatpush.bf16.msrb.mxu2 %v3122_v42  ;;  %v4147_v31 = vld [vmem:[%s5977_s4 + $0x54] sm:$0xf0]  ;;  %v3165_v32 = vld [vmem:[%s5977_s4 + $0x148] sm:$0xf]  ;;  %v3186_v35 = vor.u32 %v4181_v23, %v3183_v24  ;;  %v4145_v37 = vld [vmem:[%s5977_s4 + $0x4c] sm:$0xf] }
  0x34   : > { %1168 = vmatpush.bf16.msrb.mxu3 %v3250_v46  ;;  %v4799_v33 = vpack.c.b16 %v751_v25, %v751_v25  ;;  %v4801_v34 = vpack.c.b16 %v752_v26, %v752_v26  ;;  %v4179_v36 = vld [vmem:[%s5977_s4 + $0x154] sm:$0xf0]  ;;  %v3039_v38 = vld [vmem:[%s5977_s4 + $0x58] sm:$0xf0]  ;;  %v4177_v39 = vld [vmem:[%s5977_s4 + $0x14c] sm:$0xf]  ;;  %v3038_v41 = vor.u32 %v4147_v31, %v3037_v30 }
  0x35   : > { %v3167_v40 = vld [vmem:[%s5977_s4 + $0x158] sm:$0xf0]  ;;  %v3166_v42 = vor.u32 %v4179_v36, %v3165_v32  ;;  %v3042_v43 = vor.u32 %v4145_v37, %v3039_v38  ;;  %v3021_v44 = vld [vmem:[%s5977_s4 + $0x28] sm:$0xf]  ;;  %v4143_v45 = vld [vmem:[%s5977_s4 + $0x34] sm:$0xf0] }
  0x36   : > { %1130 = vmatpush.bf16.msrb.mxu0 %v3102_v52  ;;  %1111 = vmatmul.bf16.vlgmr.msra.gmra.mxu2 %v4799_v33  ;;  %v3149_v46 = vld [vmem:[%s5977_s4 + $0x128] sm:$0xf]  ;;  %v3170_v47 = vor.u32 %v4177_v39, %v3167_v40  ;;  %v4175_v48 = vld [vmem:[%s5977_s4 + $0x134] sm:$0xf0]  ;;  %v4141_v49 = vld [vmem:[%s5977_s4 + $0x2c] sm:$0xf] }
  0x37   : > { %1143 = vmatpush.bf16.msrb.mxu1 %v3230_v53  ;;  %1156 = vmatpush.bf16.msrb.mxu2 %v3106_v54  ;;  %v3023_v50 = vld [vmem:[%s5977_s4 + $0x38] sm:$0xf0]  ;;  %v4173_v51 = vld [vmem:[%s5977_s4 + $0x12c] sm:$0xf]  ;;  %v3022_v53 = vor.u32 %v4143_v45, %v3021_v44  ;;  %v3005_v54 = vld [vmem:[%s5977_s4 + $0x8] sm:$0xf]  ;;  %v3150_v56 = vor.u32 %v4175_v48, %v3149_v46  ;;  %s606_s22 = scalar_lea.vmem %s5980_s28, %s4760_s26 }
  0x38   : > { %1169 = vmatpush.bf16.msrb.mxu3 %v3234_v58  ;;  %1098 = vmatmul.bf16.vlgmr.msra.gmra.mxu1 %v4801_v34  ;;  %v3151_v52 = vld [vmem:[%s5977_s4 + $0x138] sm:$0xf0]  ;;  %v4139_v55 = vld [vmem:[%s5977_s4 + $0x14] sm:$0xf0]  ;;  %v3026_v57 = vor.u32 %v4141_v49, %v3023_v50  ;;  %v3133_v58 = vld [vmem:[%s5977_s4 + $0x108] sm:$0xf] }
  0x39   : > { %1124 = vmatmul.bf16.vlgmr.msra.gmra.mxu3 %v4801_v34  ;;  %1085 = vmatmul.bf16.vlgmr.msra.gmra.mxu0 %v4799_v33  ;;  %v4171_v59 = vld [vmem:[%s5977_s4 + $0x114] sm:$0xf0]  ;;  %v4137_v60 = vld [vmem:[%s5977_s4 + $0xc] sm:$0xf]  ;;  %v3154_v61 = vor.u32 %v4173_v51, %v3151_v52  ;;  %v3007_v62 = vld [vmem:[%s5977_s4 + $0x18] sm:$0xf0]  ;;  %v3006_v4 = vor.u32 %v4139_v55, %v3005_v54 }
  0x3a   : > { %1131 = vmatpush.bf16.msrb.mxu0 %v3086_v0  ;;  %v4169_v63 = vld [vmem:[%s5977_s4 + $0x10c] sm:$0xf]  ;;  %v3135_v0 = vld [vmem:[%s5977_s4 + $0x118] sm:$0xf0]  ;;  %v3365_v1 = vld [vmem:[%s5957_s3 + $0xe0] sm:$0xf]  ;;  %v3134_v8 = vor.u32 %v4171_v59, %v3133_v58  ;;  %v3010_v9 = vor.u32 %v4137_v60, %v3007_v62 }
  0x3b   : > { %1144 = vmatpush.bf16.msrb.mxu1 %v3214_v2  ;;  %1157 = vmatpush.bf16.msrb.mxu2 %v3090_v3  ;;  %v4102_v2 = vld [vmem:[%s5957_s3 + $0xec] sm:$0xf0]  ;;  %v3493_v3 = vld [vmem:[%s5957_s3 + $0x1e0] sm:$0xf]  ;;  %v4100_v6 = vld [vmem:[%s5957_s3 + $0xe4] sm:$0xf] }
  0x3c   : > { %1170 = vmatpush.bf16.msrb.mxu3 %v3218_v7  ;;  %v4134_v5 = vld [vmem:[%s5957_s3 + $0x1ec] sm:$0xf0]  ;;  %v3367_v7 = vld [vmem:[%s5957_s3 + $0xf0] sm:$0xf0]  ;;  %v4132_v10 = vld [vmem:[%s5957_s3 + $0x1e4] sm:$0xf]  ;;  %v3366_v13 = vor.u32 %v4102_v2, %v3365_v1 }
  0x3d   : > { %v3495_v11 = vld [vmem:[%s5957_s3 + $0x1f0] sm:$0xf0]  ;;  %v3349_v16 = vld [vmem:[%s5957_s3 + $0xc0] sm:$0xf]  ;;  %v4098_v17 = vld [vmem:[%s5957_s3 + $0xcc] sm:$0xf0] }
  0x3e   : > { %1132 = vmatpush.bf16.msrb.mxu0 %v3070_v12  ;;  %v3138_v12 = vor.u32 %v4169_v63, %v3135_v0  ;;  %v3477_v18 = vld [vmem:[%s5957_s3 + $0x1c0] sm:$0xf]  ;;  %v4130_v20 = vld [vmem:[%s5957_s3 + $0x1cc] sm:$0xf0]  ;;  %v4096_v21 = vld [vmem:[%s5957_s3 + $0xc4] sm:$0xf]  ;;  %v3350_v25 = vor.u32 %v4098_v17, %v3349_v16 }
  0x3f   : > { %1145 = vmatpush.bf16.msrb.mxu1 %v3198_v14  ;;  %1158 = vmatpush.bf16.msrb.mxu2 %v3074_v15  ;;  %v3494_v14 = vor.u32 %v4134_v5, %v3493_v3  ;;  %v3370_v15 = vor.u32 %v4100_v6, %v3367_v7  ;;  %v3351_v22 = vld [vmem:[%s5957_s3 + $0xd0] sm:$0xf0]  ;;  %v4128_v23 = vld [vmem:[%s5957_s3 + $0x1c4] sm:$0xf]  ;;  %v3478_v26 = vor.u32 %v4130_v20, %v3477_v18  ;;  %v3461_v30 = vld [vmem:[%s5957_s3 + $0x1a0] sm:$0xf] }
  0x40   : > { %1171 = vmatpush.bf16.msrb.mxu3 %v3202_v19  ;;  %v3498_v19 = vor.u32 %v4132_v10, %v3495_v11  ;;  %v3479_v24 = vld [vmem:[%s5957_s3 + $0x1d0] sm:$0xf0]  ;;  %v4126_v32 = vld [vmem:[%s5957_s3 + $0x1ac] sm:$0xf0]  ;;  %v4124_v37 = vld [vmem:[%s5957_s3 + $0x1a4] sm:$0xf] }
  0x41   : > { %v3482_v31 = vor.u32 %v4128_v23, %v3479_v24  ;;  %v3335_v36 = vld [vmem:[%s5957_s3 + $0xb0] sm:$0xf0]  ;;  %v3462_v40 = vor.u32 %v4126_v32, %v3461_v30  ;;  %v3445_v44 = vld [vmem:[%s5957_s3 + $0x180] sm:$0xf]  ;;  %v4122_v46 = vld [vmem:[%s5957_s3 + $0x18c] sm:$0xf0] }
  0x42   : > { %1133 = vmatpush.bf16.msrb.mxu0 %v3054_v27  ;;  %v3354_v27 = vor.u32 %v4096_v21, %v3351_v22  ;;  %v3463_v38 = vld [vmem:[%s5957_s3 + $0x1b0] sm:$0xf0]  ;;  %v4120_v49 = vld [vmem:[%s5957_s3 + $0x184] sm:$0xf]  ;;  %v3446_v52 = vor.u32 %v4122_v46, %v3445_v44  ;;  %v3301_v54 = vld [vmem:[%s5957_s3 + $0x60] sm:$0xf] }
  0x43   : > { %1146 = vmatpush.bf16.msrb.mxu1 %v3182_v28  ;;  %1159 = vmatpush.bf16.msrb.mxu2 %v3058_v29  ;;  %v3333_v28 = vld [vmem:[%s5957_s3 + $0xa0] sm:$0xf]  ;;  %v4094_v29 = vld [vmem:[%s5957_s3 + $0xac] sm:$0xf0]  ;;  %v3466_v45 = vor.u32 %v4124_v37, %v3463_v38  ;;  %v3319_v48 = vld [vmem:[%s5957_s3 + $0x90] sm:$0xf0] }
  0x44   : > { %1172 = vmatpush.bf16.msrb.mxu3 %v3186_v35  ;;  %v4092_v35 = vld [vmem:[%s5957_s3 + $0xa4] sm:$0xf]  ;;  %v3334_v39 = vor.u32 %v4094_v29, %v3333_v28  ;;  %v3447_v50 = vld [vmem:[%s5957_s3 + $0x190] sm:$0xf0]  ;;  %v4086_v55 = vld [vmem:[%s5957_s3 + $0x6c] sm:$0xf0] }
  0x45   : > { %v4118_v58 = vld [vmem:[%s5957_s3 + $0x16c] sm:$0xf0]  ;;  %v4084_v59 = vld [vmem:[%s5957_s3 + $0x64] sm:$0xf]  ;;  %v3303_v60 = vld [vmem:[%s5957_s3 + $0x70] sm:$0xf0]  ;;  %v3302_v63 = vor.u32 %v4086_v55, %v3301_v54 }
  0x46   : > { %1134 = vmatpush.bf16.msrb.mxu0 %v3038_v41  ;;  %v3338_v41 = vor.u32 %v4092_v35, %v3335_v36  ;;  %v3431_v62 = vld [vmem:[%s5957_s3 + $0x170] sm:$0xf0]  ;;  %v3306_v1 = vor.u32 %v4084_v59, %v3303_v60  ;;  %v3285_v2 = vld [vmem:[%s5957_s3 + $0x40] sm:$0xf]  ;;  %v4082_v3 = vld [vmem:[%s5957_s3 + $0x4c] sm:$0xf0] }
  0x47   : > { %1147 = vmatpush.bf16.msrb.mxu1 %v3166_v42  ;;  %1160 = vmatpush.bf16.msrb.mxu2 %v3042_v43  ;;  %v3317_v42 = vld [vmem:[%s5957_s3 + $0x80] sm:$0xf]  ;;  %v4090_v43 = vld [vmem:[%s5957_s3 + $0x8c] sm:$0xf0]  ;;  %v4080_v7 = vld [vmem:[%s5957_s3 + $0x44] sm:$0xf]  ;;  %v3286_v11 = vor.u32 %v4082_v3, %v3285_v2 }
  0x48   : > { %1173 = vmatpush.bf16.msrb.mxu3 %v3170_v47  ;;  %v4088_v47 = vld [vmem:[%s5957_s3 + $0x84] sm:$0xf]  ;;  %v3318_v51 = vor.u32 %v4090_v43, %v3317_v42  ;;  %v4114_v6 = vld [vmem:[%s5957_s3 + $0x14c] sm:$0xf0]  ;;  %v3415_v10 = vld [vmem:[%s5957_s3 + $0x150] sm:$0xf0] }
  0x49   : > { %v3397_v16 = vld [vmem:[%s5957_s3 + $0x120] sm:$0xf]  ;;  %v4110_v17 = vld [vmem:[%s5957_s3 + $0x12c] sm:$0xf0]  ;;  %v4076_v18 = vld [vmem:[%s5957_s3 + $0x24] sm:$0xf] }
  0x4a   : > { %1135 = vmatpush.bf16.msrb.mxu0 %v3022_v53  ;;  %v3322_v53 = vor.u32 %v4088_v47, %v3319_v48  ;;  %v3271_v20 = vld [vmem:[%s5957_s3 + $0x30] sm:$0xf0]  ;;  %v4108_v21 = vld [vmem:[%s5957_s3 + $0x124] sm:$0xf]  ;;  %v3253_v24 = vld [vmem:[%s5957_s3] sm:$0xf] }
  0x4b   : > { %1148 = vmatpush.bf16.msrb.mxu1 %v3150_v56  ;;  %1161 = vmatpush.bf16.msrb.mxu2 %v3026_v57  ;;  %v3429_v56 = vld [vmem:[%s5957_s3 + $0x160] sm:$0xf]  ;;  %v3450_v57 = vor.u32 %v4120_v49, %v3447_v50  ;;  %v3399_v22 = vld [vmem:[%s5957_s3 + $0x130] sm:$0xf0]  ;;  %v3274_v28 = vor.u32 %v4076_v18, %v3271_v20  ;;  %v4106_v29 = vld [vmem:[%s5957_s3 + $0x10c] sm:$0xf0] }
  0x4c   : > { %1174 = vmatpush.bf16.msrb.mxu3 %v3154_v61  ;;  %v4116_v61 = vld [vmem:[%s5957_s3 + $0x164] sm:$0xf]  ;;  %v3430_v0 = vor.u32 %v4118_v58, %v3429_v56  ;;  %v3402_v32 = vor.u32 %v4108_v21, %v3399_v22  ;;  %v3255_v35 = vld [vmem:[%s5957_s3 + $0x10] sm:$0xf0]  ;;  %v3373_v38 = vld [vmem:[%s5957_s3 + $0xe8] sm:$0xf] }
  0x4d   : > { %v3434_v5 = vor.u32 %v4116_v61, %v3431_v62  ;;  %v4072_v30 = vld [vmem:[%s5957_s3 + $0x4] sm:$0xf]  ;;  %v3383_v37 = vld [vmem:[%s5957_s3 + $0x110] sm:$0xf0]  ;;  %v4135_v42 = vld [vmem:[%s5957_s3 + $0x1f4] sm:$0xf0] }
  0x4e   : > { %1136 = vmatpush.bf16.msrb.mxu0 %v3006_v4  ;;  %v3413_v4 = vld [vmem:[%s5957_s3 + $0x140] sm:$0xf]  ;;  %v4104_v36 = vld [vmem:[%s5957_s3 + $0x104] sm:$0xf]  ;;  %v4101_v43 = vld [vmem:[%s5957_s3 + $0xec] sm:$0xf]  ;;  %v3258_v47 = vor.u32 %v4072_v30, %v3255_v35 }
  0x4f   : > { %1149 = vmatpush.bf16.msrb.mxu1 %v3134_v8  ;;  %1162 = vmatpush.bf16.msrb.mxu2 %v3010_v9  ;;  %v3287_v8 = vld [vmem:[%s5957_s3 + $0x50] sm:$0xf0]  ;;  %v4112_v9 = vld [vmem:[%s5957_s3 + $0x144] sm:$0xf]  ;;  %v3375_v44 = vld [vmem:[%s5957_s3 + $0xf8] sm:$0xf0] }
  0x50   : > { %1175 = vmatpush.bf16.msrb.mxu3 %v3138_v12  ;;  %v3269_v12 = vld [vmem:[%s5957_s3 + $0x20] sm:$0xf]  ;;  %v4133_v48 = vld [vmem:[%s5957_s3 + $0x1ec] sm:$0xf]  ;;  %v3503_v49 = vld [vmem:[%s5957_s3 + $0x1f8] sm:$0xf0]  ;;  %v3378_v54 = vor.u32 %v4101_v43, %v3375_v44 }
  0x51   : > { %1137 = vmatmul.bf16.vlgmr.msrb.gmra.mxu0 %v4799_v33  ;;  %v3357_v55 = vld [vmem:[%s5957_s3 + $0xc8] sm:$0xf]  ;;  %v4099_v56 = vld [vmem:[%s5957_s3 + $0xd4] sm:$0xf0]  ;;  %v3506_v58 = vor.u32 %v4133_v48, %v3503_v49  ;;  %v4097_v61 = vld [vmem:[%s5957_s3 + $0xcc] sm:$0xf] }
  0x52   : > { %1508 = vmatpush.bf16.msra.mxu0 %v3366_v13  ;;  %1163 = vmatmul.bf16.vlgmr.msrb.gmra.mxu2 %v4799_v33  ;;  %v4078_v13 = vld [vmem:[%s5957_s3 + $0x2c] sm:$0xf0]  ;;  %v4131_v60 = vld [vmem:[%s5957_s3 + $0x1d4] sm:$0xf0]  ;;  %v3359_v62 = vld [vmem:[%s5957_s3 + $0xd8] sm:$0xf0]  ;;  %v3358_v2 = vor.u32 %v4099_v56, %v3357_v55 }
  0x53   : > { %1521 = vmatpush.bf16.msra.mxu1 %v3494_v14  ;;  %1534 = vmatpush.bf16.msra.mxu2 %v3370_v15  ;;  %v3414_v14 = vor.u32 %v4114_v6, %v3413_v4  ;;  %v3290_v15 = vor.u32 %v4080_v7, %v3287_v8  ;;  %v3270_v23 = vor.u32 %v4078_v13, %v3269_v12  ;;  %v4095_v6 = vld [vmem:[%s5957_s3 + $0xb4] sm:$0xf0]  ;;  %v3469_v7 = vld [vmem:[%s5957_s3 + $0x1a8] sm:$0xf]  ;;  %v4125_v12 = vld [vmem:[%s5957_s3 + $0x1ac] sm:$0xf] }
  0x54   : > { %1547 = vmatpush.bf16.msra.mxu3 %v3498_v19  ;;  %1150 = vmatmul.bf16.vlgmr.msrb.gmra.mxu1 %v4801_v34  ;;  %v3418_v19 = vor.u32 %v4112_v9, %v3415_v10  ;;  %v3362_v4 = vor.u32 %v4097_v61, %v3359_v62  ;;  %v4127_v9 = vld [vmem:[%s5957_s3 + $0x1b4] sm:$0xf0]  ;;  %v4093_v10 = vld [vmem:[%s5957_s3 + $0xac] sm:$0xf]  ;;  %v3471_v13 = vld [vmem:[%s5957_s3 + $0x1b8] sm:$0xf0] }
  0x55   : > { %1176 = vmatmul.bf16.vlgmr.msrb.gmra.mxu3 %v4801_v34  ;;  %v4091_v18 = vld [vmem:[%s5957_s3 + $0x94] sm:$0xf0]  ;;  %v3474_v20 = vor.u32 %v4125_v12, %v3471_v13  ;;  %v4089_v22 = vld [vmem:[%s5957_s3 + $0x8c] sm:$0xf]  ;;  %v3293_v43 = vld [vmem:[%s5957_s3 + $0x48] sm:$0xf] }
  0x56   : > { %1509 = vmatpush.bf16.msra.mxu0 %v3350_v25  ;;  %v4074_v25 = vld [vmem:[%s5957_s3 + $0xc] sm:$0xf0]  ;;  %v4123_v21 = vld [vmem:[%s5957_s3 + $0x194] sm:$0xf0]  ;;  %v4081_v48 = vld [vmem:[%s5957_s3 + $0x4c] sm:$0xf] }
  0x57   : > { %1522 = vmatpush.bf16.msra.mxu1 %v3478_v26  ;;  %1535 = vmatpush.bf16.msra.mxu2 %v3354_v27  ;;  %v3381_v26 = vld [vmem:[%s5957_s3 + $0x100] sm:$0xf]  ;;  %v3398_v27 = vor.u32 %v4110_v17, %v3397_v16  ;;  %v3325_v17 = vld [vmem:[%s5957_s3 + $0x88] sm:$0xf]  ;;  %v4087_v30 = vld [vmem:[%s5957_s3 + $0x74] sm:$0xf0] }
  0x58   : > { %1548 = vmatpush.bf16.msra.mxu3 %v3482_v31  ;;  %v612_v31 = vld [vmem:[%s5046_s29] sm:$0xff]  ;;  %v3382_v46 = vor.u32 %v4106_v29, %v3381_v26  ;;  %v3326_v26 = vor.u32 %v4091_v18, %v3325_v17  ;;  %v3309_v29 = vld [vmem:[%s5957_s3 + $0x68] sm:$0xf]  ;;  %v4119_v35 = vld [vmem:[%s5957_s3 + $0x174] sm:$0xf0]  ;;  %vm2905_vm2 = vcmask 7168  }
  0x59   : > { %v1183_v50 = vunpack.c.h.b16 %v612_v31  ;;  %v4083_v44 = vld [vmem:[%s5957_s3 + $0x54] sm:$0xf0]  ;;  %v3295_v49 = vld [vmem:[%s5957_s3 + $0x58] sm:$0xf0]  ;;  %v3277_v55 = vld [vmem:[%s5957_s3 + $0x28] sm:$0xf] }
  0x5a   : > { %1510 = vmatpush.bf16.msra.mxu0 %v3334_v39  ;;  %v4103_v39 = vld [vmem:[%s5957_s3 + $0xf4] sm:$0xf0]  ;;  %v4077_v61 = vld [vmem:[%s5957_s3 + $0x2c] sm:$0xf]  ;;  %v3279_v62 = vld [vmem:[%s5957_s3 + $0x38] sm:$0xf0] }
  0x5b   : > { %1523 = vmatpush.bf16.msra.mxu1 %v3462_v40  ;;  %1536 = vmatpush.bf16.msra.mxu2 %v3338_v41  ;;  %v3501_v40 = vld [vmem:[%s5957_s3 + $0x1e8] sm:$0xf]  ;;  %v3254_v41 = vor.u32 %v4074_v25, %v3253_v24  ;;  %v4121_v24 = vld [vmem:[%s5957_s3 + $0x18c] sm:$0xf]  ;;  %v3455_v25 = vld [vmem:[%s5957_s3 + $0x198] sm:$0xf0] }
  0x5c   : > { %1549 = vmatpush.bf16.msra.mxu3 %v3466_v45  ;;  %v1182_v45 = vunpack.c.l.b16 %v612_v31  ;;  %v3437_v31 = vld [vmem:[%s5957_s3 + $0x168] sm:$0xf]  ;;  %v4079_v56 = vld [vmem:[%s5957_s3 + $0x34] sm:$0xf0]  ;;  %v4105_v12 = vld [vmem:[%s5957_s3 + $0x10c] sm:$0xf] }
  0x5d   : > { %v3391_v13 = vld [vmem:[%s5957_s3 + $0x118] sm:$0xf0]  ;;  %v3565_v18 = vld [vmem:[%s5960_s6 + $0x70] sm:$0xf] }
  0x5e   : > { %1511 = vmatpush.bf16.msra.mxu0 %v3318_v51  ;;  %v3386_v51 = vor.u32 %v4104_v36, %v3383_v37  ;;  %v5106_v59 = vpack.c.b16 %v1182_v45, %v1182_v45  ;;  %v4085_v36 = vld [vmem:[%s5957_s3 + $0x6c] sm:$0xf]  ;;  %v3311_v37 = vld [vmem:[%s5957_s3 + $0x78] sm:$0xf0]  ;;  %v3421_v45 = vld [vmem:[%s5957_s3 + $0x148] sm:$0xf]  ;;  %v3394_v17 = vor.u32 %v4105_v12, %v3391_v13 }
  0x5f   : > { %1524 = vmatpush.bf16.msra.mxu1 %v3446_v52  ;;  %1537 = vmatpush.bf16.msra.mxu2 %v3322_v53  ;;  %v3374_v52 = vor.u32 %v4103_v39, %v3373_v38  ;;  %v3502_v53 = vor.u32 %v4135_v42, %v3501_v40  ;;  %v4117_v38 = vld [vmem:[%s5957_s3 + $0x16c] sm:$0xf]  ;;  %v3439_v39 = vld [vmem:[%s5957_s3 + $0x178] sm:$0xf0]  ;;  %v3310_v40 = vor.u32 %v4087_v30, %v3309_v29  ;;  %v3621_v29 = vld [vmem:[%s5960_s6 + $0xe0] sm:$0xf] }
  0x60   : > { %1550 = vmatpush.bf16.msra.mxu3 %v3450_v57  ;;  %v3485_v57 = vld [vmem:[%s5957_s3 + $0x1c8] sm:$0xf]  ;;  %v3314_v42 = vor.u32 %v4085_v36, %v3311_v37  ;;  %v3613_v37 = vld [vmem:[%s5960_s6 + $0xd0] sm:$0xf] }
  0x61   : > { %v3486_v3 = vor.u32 %v4131_v60, %v3485_v57  ;;  %v3405_v57 = vld [vmem:[%s5957_s3 + $0x128] sm:$0xf]  ;;  %v4111_v60 = vld [vmem:[%s5957_s3 + $0x134] sm:$0xf0] }
  0x62   : > { %1512 = vmatpush.bf16.msra.mxu0 %v3302_v63  ;;  %v5117_v63 = vpack.c.b16 %v1183_v50, %v1183_v50  ;;  %v4113_v50 = vld [vmem:[%s5957_s3 + $0x14c] sm:$0xf] }
  0x63   : > { %1525 = vmatpush.bf16.msra.mxu1 %v3430_v0  ;;  %1538 = vmatpush.bf16.msra.mxu2 %v3306_v1  ;;  %v4129_v0 = vld [vmem:[%s5957_s3 + $0x1cc] sm:$0xf]  ;;  %v3487_v1 = vld [vmem:[%s5957_s3 + $0x1d8] sm:$0xf0] }
  0x64   : > { %1551 = vmatpush.bf16.msra.mxu3 %v3434_v5  ;;  %v3341_v5 = vld [vmem:[%s5957_s3 + $0xa8] sm:$0xf]  ;;  %v3490_v8 = vor.u32 %v4129_v0, %v3487_v1  ;;  %v4109_v0 = vld [vmem:[%s5957_s3 + $0x12c] sm:$0xf]  ;;  %v3407_v1 = vld [vmem:[%s5957_s3 + $0x138] sm:$0xf0] }
  0x66   : > { %1513 = vmatpush.bf16.msra.mxu0 %v3286_v11  ;;  %v3343_v11 = vld [vmem:[%s5957_s3 + $0xb8] sm:$0xf0] }
  0x67   : > { %1526 = vmatpush.bf16.msra.mxu1 %v3414_v14  ;;  %1539 = vmatpush.bf16.msra.mxu2 %v3290_v15  ;;  %v3342_v14 = vor.u32 %v4095_v6, %v3341_v5  ;;  %v3470_v15 = vor.u32 %v4127_v9, %v3469_v7  ;;  %v3346_v16 = vor.u32 %v4093_v10, %v3343_v11  ;;  %v3261_v5 = vld [vmem:[%s5957_s3 + $0x8] sm:$0xf]  ;;  %v4075_v6 = vld [vmem:[%s5957_s3 + $0x14] sm:$0xf0]  ;;  %v4073_v10 = vld [vmem:[%s5957_s3 + $0xc] sm:$0xf] }
  0x68   : > { %1552 = vmatpush.bf16.msra.mxu3 %v3418_v19  ;;  %v3453_v19 = vld [vmem:[%s5957_s3 + $0x188] sm:$0xf]  ;;  %v4107_v9 = vld [vmem:[%s5957_s3 + $0x114] sm:$0xf0]  ;;  %v3263_v11 = vld [vmem:[%s5957_s3 + $0x18] sm:$0xf0] }
  0x69   : > { %v3389_v7 = vld [vmem:[%s5957_s3 + $0x108] sm:$0xf] }
  0x6a   : > { %1514 = vmatpush.bf16.msra.mxu0 %v3270_v23  ;;  %v3327_v23 = vld [vmem:[%s5957_s3 + $0x98] sm:$0xf0] }
  0x6b   : > { %1527 = vmatpush.bf16.msra.mxu1 %v3398_v27  ;;  %1540 = vmatpush.bf16.msra.mxu2 %v3274_v28  ;;  %v3454_v27 = vor.u32 %v4123_v21, %v3453_v19  ;;  %v3330_v28 = vor.u32 %v4089_v22, %v3327_v23  ;;  %v4215_v19 = vld [vmem:[%s5960_s6 + $0x74] sm:$0xf0]  ;;  %v3557_v21 = vld [vmem:[%s5960_s6 + $0x60] sm:$0xf]  ;;  %v4213_v22 = vld [vmem:[%s5960_s6 + $0x64] sm:$0xf0] }
  0x6c   : > { %1553 = vmatpush.bf16.msra.mxu3 %v3402_v32  ;;  %v3458_v32 = vor.u32 %v4121_v24, %v3455_v25  ;;  %v3558_v23 = vor.u32 %v4213_v22, %v3557_v21  ;;  %v3629_v24 = vld [vmem:[%s5960_s6 + $0xf0] sm:$0xf]  ;;  %v4231_v25 = vld [vmem:[%s5960_s6 + $0xf4] sm:$0xf0]  ;;  %v3559_v21 = vld [vmem:[%s5960_s6 + $0x68] sm:$0xf0] }
  0x6d   : > { %v3573_v22 = vld [vmem:[%s5960_s6 + $0x80] sm:$0xf] }
  0x6e   : > { %1515 = vmatpush.bf16.msra.mxu0 %v3254_v41  ;;  %v3438_v41 = vor.u32 %v4119_v35, %v3437_v31  ;;  %v4229_v31 = vld [vmem:[%s5960_s6 + $0xe4] sm:$0xf0] }
  0x6f   : > { %1528 = vmatpush.bf16.msra.mxu1 %v3382_v46  ;;  %1541 = vmatpush.bf16.msra.mxu2 %v3258_v47  ;;  %v3442_v46 = vor.u32 %v4117_v38, %v3439_v39  ;;  %v4115_v47 = vld [vmem:[%s5957_s3 + $0x154] sm:$0xf0]  ;;  %v4209_v35 = vld [vmem:[%s5960_s6 + $0x44] sm:$0xf0]  ;;  %v3622_v36 = vor.u32 %v4229_v31, %v3621_v29 }
  0x70   : > { %1554 = vmatpush.bf16.msra.mxu3 %v3386_v51  ;;  %v3423_v51 = vld [vmem:[%s5957_s3 + $0x158] sm:$0xf0]  ;;  %v4227_v38 = vld [vmem:[%s5960_s6 + $0xd4] sm:$0xf0] }
  0x71   : > { %1516 = vmatmul.bf16.vlgmr.msra.gmra.mxu0 %v5106_v59 }
  0x72   : > { %1560 = vmatpush.bf16.msrb.mxu0 %v3374_v52  ;;  %1542 = vmatmul.bf16.vlgmr.msra.gmra.mxu2 %v5106_v59  ;;  %v3294_v52 = vor.u32 %v4083_v44, %v3293_v43  ;;  %v3605_v44 = vld [vmem:[%s5960_s6 + $0xc0] sm:$0xf] }
  0x73   : > { %1573 = vmatpush.bf16.msrb.mxu1 %v3502_v53  ;;  %1586 = vmatpush.bf16.msrb.mxu2 %v3378_v54  ;;  %v3422_v53 = vor.u32 %v4115_v47, %v3421_v45  ;;  %v3298_v54 = vor.u32 %v4081_v48, %v3295_v49  ;;  %v4225_v45 = vld [vmem:[%s5960_s6 + $0xc4] sm:$0xf0]  ;;  %v3525_v47 = vld [vmem:[%s5960_s6 + $0x20] sm:$0xf]  ;;  %v3597_v49 = vld [vmem:[%s5960_s6 + $0xb0] sm:$0xf] }
  0x74   : > { %1599 = vmatpush.bf16.msrb.mxu3 %v3506_v58  ;;  %1529 = vmatmul.bf16.vlgmr.msra.gmra.mxu1 %v5117_v63  ;;  %v3426_v58 = vor.u32 %v4113_v50, %v3423_v51  ;;  %v4205_v48 = vld [vmem:[%s5960_s6 + $0x24] sm:$0xf0]  ;;  %v4223_v50 = vld [vmem:[%s5960_s6 + $0xb4] sm:$0xf0] }
  0x75   : > { %1555 = vmatmul.bf16.vlgmr.msra.gmra.mxu3 %v5117_v63  ;;  %v3526_v51 = vor.u32 %v4205_v48, %v3525_v47  ;;  %v3669_v48 = vld [vmem:[%s5960_s6 + $0x140] sm:$0xf] }
  0x76   : > { %1561 = vmatpush.bf16.msrb.mxu0 %v3358_v2  ;;  %v3278_v2 = vor.u32 %v4079_v56, %v3277_v55  ;;  %v3589_v56 = vld [vmem:[%s5960_s6 + $0xa0] sm:$0xf] }
  0x77   : > { %1574 = vmatpush.bf16.msrb.mxu1 %v3486_v3  ;;  %1587 = vmatpush.bf16.msrb.mxu2 %v3362_v4  ;;  %v3406_v3 = vor.u32 %v4111_v60, %v3405_v57  ;;  %v3282_v4 = vor.u32 %v4077_v61, %v3279_v62  ;;  %v4221_v57 = vld [vmem:[%s5960_s6 + $0xa4] sm:$0xf0]  ;;  %v3693_v62 = vld [vmem:[%s5960_s6 + $0x170] sm:$0xf] }
  0x78   : > { %1600 = vmatpush.bf16.msrb.mxu3 %v3490_v8  ;;  %v3410_v8 = vor.u32 %v4109_v0, %v3407_v1  ;;  %v3590_v60 = vor.u32 %v4221_v57, %v3589_v56  ;;  %v4201_v61 = vld [vmem:[%s5960_s6 + $0x4] sm:$0xf0]  ;;  %v4247_v0 = vld [vmem:[%s5960_s6 + $0x174] sm:$0xf0]  ;;  %v3741_v56 = vld [vmem:[%s5960_s6 + $0x1d0] sm:$0xf] }
  0x79   : > { %v3694_v1 = vor.u32 %v4247_v0, %v3693_v62  ;;  %v4259_v57 = vld [vmem:[%s5960_s6 + $0x1d4] sm:$0xf0] }
  0x7a   : > { %1562 = vmatpush.bf16.msrb.mxu0 %v3342_v14  ;;  %v3262_v14 = vor.u32 %v4075_v6, %v3261_v5  ;;  %v4219_v5 = vld [vmem:[%s5960_s6 + $0x94] sm:$0xf0] }
  0x7b   : > { %1575 = vmatpush.bf16.msrb.mxu1 %v3470_v15  ;;  %1588 = vmatpush.bf16.msrb.mxu2 %v3346_v16  ;;  %v3390_v15 = vor.u32 %v4107_v9, %v3389_v7  ;;  %v3266_v16 = vor.u32 %v4073_v10, %v3263_v11 }
  0x7c   : > { %1601 = vmatpush.bf16.msrb.mxu3 %v3474_v20  ;;  %v3566_v20 = vor.u32 %v4215_v19, %v3565_v18  ;;  %v4245_v18 = vld [vmem:[%s5960_s6 + $0x164] sm:$0xf0]  ;;  %v4212_v19 = vld [vmem:[%s5960_s6 + $0x64] sm:$0xf] }
  0x7e   : > { %1563 = vmatpush.bf16.msrb.mxu0 %v3326_v26  ;;  %v3630_v26 = vor.u32 %v4231_v25, %v3629_v24  ;;  %v3562_v24 = vor.u32 %v4212_v19, %v3559_v21  ;;  %v4237_v19 = vld [vmem:[%s5960_s6 + $0x124] sm:$0xf0] }
  0x7f   : > { %1576 = vmatpush.bf16.msrb.mxu1 %v3454_v27  ;;  %1589 = vmatpush.bf16.msrb.mxu2 %v3330_v28  ;;  %v3549_v27 = vld [vmem:[%s5960_s6 + $0x50] sm:$0xf]  ;;  %v4211_v28 = vld [vmem:[%s5960_s6 + $0x54] sm:$0xf0] }
  0x80   : > { %1602 = vmatpush.bf16.msrb.mxu3 %v3458_v32  ;;  %v3550_v30 = vor.u32 %v4211_v28, %v3549_v27  ;;  %v3541_v32 = vld [vmem:[%s5960_s6 + $0x40] sm:$0xf]  ;;  %v4263_v27 = vld [vmem:[%s5960_s6 + $0x1f4] sm:$0xf0]  ;;  %v4230_v28 = vld [vmem:[%s5960_s6 + $0xf4] sm:$0xf] }
  0x81   : > { %v3542_v39 = vor.u32 %v4209_v35, %v3541_v32  ;;  %v3677_v35 = vld [vmem:[%s5960_s6 + $0x150] sm:$0xf] }
  0x82   : > { %1564 = vmatpush.bf16.msrb.mxu0 %v3310_v40  ;;  %v3614_v40 = vor.u32 %v4227_v38, %v3613_v37  ;;  %v4210_v38 = vld [vmem:[%s5960_s6 + $0x54] sm:$0xf] }
  0x83   : > { %1577 = vmatpush.bf16.msrb.mxu1 %v3438_v41  ;;  %1590 = vmatpush.bf16.msrb.mxu2 %v3314_v42  ;;  %v3533_v41 = vld [vmem:[%s5960_s6 + $0x30] sm:$0xf]  ;;  %v4207_v42 = vld [vmem:[%s5960_s6 + $0x34] sm:$0xf0] }
  0x84   : > { %1603 = vmatpush.bf16.msrb.mxu3 %v3442_v46  ;;  %v3534_v43 = vor.u32 %v4207_v42, %v3533_v41  ;;  %v3606_v46 = vor.u32 %v4225_v45, %v3605_v44  ;;  %v3749_v41 = vld [vmem:[%s5960_s6 + $0x1e0] sm:$0xf]  ;;  %v4261_v42 = vld [vmem:[%s5960_s6 + $0x1e4] sm:$0xf0] }
  0x85   : > { %v3750_v45 = vor.u32 %v4261_v42, %v3749_v41  ;;  %v4253_v42 = vld [vmem:[%s5960_s6 + $0x1a4] sm:$0xf0] }
  0x86   : > { %1565 = vmatpush.bf16.msrb.mxu0 %v3294_v52  ;;  %v3598_v52 = vor.u32 %v4223_v50, %v3597_v49  ;;  %v4241_v49 = vld [vmem:[%s5960_s6 + $0x144] sm:$0xf0]  ;;  %v4208_v50 = vld [vmem:[%s5960_s6 + $0x44] sm:$0xf] }
  0x87   : > { %1578 = vmatpush.bf16.msrb.mxu1 %v3422_v53  ;;  %1591 = vmatpush.bf16.msrb.mxu2 %v3298_v54  ;;  %v3517_v53 = vld [vmem:[%s5960_s6 + $0x10] sm:$0xf]  ;;  %v4203_v54 = vld [vmem:[%s5960_s6 + $0x14] sm:$0xf0] }
  0x88   : > { %1604 = vmatpush.bf16.msrb.mxu3 %v3426_v58  ;;  %v3518_v55 = vor.u32 %v4203_v54, %v3517_v53  ;;  %v3509_v58 = vld [vmem:[%s5960_s6] sm:$0xf]  ;;  %v3543_v53 = vld [vmem:[%s5960_s6 + $0x48] sm:$0xf0] }
  0x89   : > { %v3510_v7 = vor.u32 %v4201_v61, %v3509_v58  ;;  %v4226_v58 = vld [vmem:[%s5960_s6 + $0xd4] sm:$0xf]  ;;  %v3615_v61 = vld [vmem:[%s5960_s6 + $0xd8] sm:$0xf0] }
  0x8a   : > { %1566 = vmatpush.bf16.msrb.mxu0 %v3278_v2  ;;  %v4214_v2 = vld [vmem:[%s5960_s6 + $0x74] sm:$0xf]  ;;  %v3618_v0 = vor.u32 %v4226_v58, %v3615_v61  ;;  %v4251_v61 = vld [vmem:[%s5960_s6 + $0x194] sm:$0xf0] }
  0x8b   : > { %1579 = vmatpush.bf16.msrb.mxu1 %v3406_v3  ;;  %1592 = vmatpush.bf16.msrb.mxu2 %v3282_v4  ;;  %v3567_v3 = vld [vmem:[%s5960_s6 + $0x78] sm:$0xf0]  ;;  %v3581_v4 = vld [vmem:[%s5960_s6 + $0x90] sm:$0xf] }
  0x8c   : > { %1605 = vmatpush.bf16.msrb.mxu3 %v3410_v8  ;;  %v3570_v8 = vor.u32 %v4214_v2, %v3567_v3  ;;  %v3582_v9 = vor.u32 %v4219_v5, %v3581_v4  ;;  %v4239_v2 = vld [vmem:[%s5960_s6 + $0x134] sm:$0xf0]  ;;  %v4206_v3 = vld [vmem:[%s5960_s6 + $0x34] sm:$0xf]  ;;  %v3535_v5 = vld [vmem:[%s5960_s6 + $0x38] sm:$0xf0] }
  0x8e   : > { %1567 = vmatpush.bf16.msrb.mxu0 %v3262_v14 }
  0x8f   : > { %1580 = vmatpush.bf16.msrb.mxu1 %v3390_v15  ;;  %1593 = vmatpush.bf16.msrb.mxu2 %v3266_v16 }
  0x90   : > { %1606 = vmatpush.bf16.msrb.mxu3 %v3394_v17  ;;  %v3685_v17 = vld [vmem:[%s5960_s6 + $0x160] sm:$0xf] }
  0x91   : > { %1568 = vmatmul.bf16.vlgmr.msrb.gmra.mxu0 %v5106_v59 }
  0x92   : > { %1581 = vmatmul.bf16.vlgmr.msrb.gmra.mxu1 %v5117_v63  ;;  %1594 = vmatmul.bf16.vlgmr.msrb.gmra.mxu2 %v5106_v59 }
  0x93   : > { %1607 = vmatmul.bf16.vlgmr.msrb.gmra.mxu3 %v5117_v63  ;;  %2024 = vmatpush.bf16.msra.mxu0 %v3566_v20  ;;  %v3686_v20 = vor.u32 %v4245_v18, %v3685_v17  ;;  %v3653_v18 = vld [vmem:[%s5960_s6 + $0x120] sm:$0xf] }
  0x94   : > { %2037 = vmatpush.bf16.msra.mxu1 %v3630_v26  ;;  %2050 = vmatpush.bf16.msra.mxu2 %v3694_v1  ;;  %v3757_v26 = vld [vmem:[%s5960_s6 + $0x1f0] sm:$0xf] }
  0x95   : > { %v3758_v29 = vor.u32 %v4263_v27, %v3757_v26  ;;  %v3661_v1 = vld [vmem:[%s5960_s6 + $0x130] sm:$0xf]  ;;  %v4255_v27 = vld [vmem:[%s5960_s6 + $0x1b4] sm:$0xf0] }
  0x96   : > { %v3662_v4 = vor.u32 %v4239_v2, %v3661_v1  ;;  %v3725_v26 = vld [vmem:[%s5960_s6 + $0x1b0] sm:$0xf]  ;;  %v3583_v1 = vld [vmem:[%s5960_s6 + $0x98] sm:$0xf0] }
  0x97   : > { %2025 = vmatpush.bf16.msra.mxu0 %v3558_v23  ;;  %v4217_v23 = vld [vmem:[%s5960_s6 + $0x84] sm:$0xf0]  ;;  %2063 = vmatpush.bf16.msra.mxu3 %v3758_v29  ;;  %v3726_v29 = vor.u32 %v4255_v27, %v3725_v26  ;;  %v3751_v27 = vld [vmem:[%s5960_s6 + $0x1e8] sm:$0xf0] }
  0x98   : > { %2038 = vmatpush.bf16.msra.mxu1 %v3622_v36  ;;  %v3574_v25 = vor.u32 %v4217_v23, %v3573_v22  ;;  %2051 = vmatpush.bf16.msra.mxu2 %v3686_v20  ;;  %v4243_v36 = vld [vmem:[%s5960_s6 + $0x154] sm:$0xf0]  ;;  %v4204_v20 = vld [vmem:[%s5960_s6 + $0x24] sm:$0xf]  ;;  %v3654_v22 = vor.u32 %v4237_v19, %v3653_v18  ;;  %v3527_v23 = vld [vmem:[%s5960_s6 + $0x28] sm:$0xf0] }
  0x99   : > { %v3678_v37 = vor.u32 %v4243_v36, %v3677_v35  ;;  %v4235_v35 = vld [vmem:[%s5960_s6 + $0x114] sm:$0xf0] }
  0x9b   : > { %2026 = vmatpush.bf16.msra.mxu0 %v3550_v30  ;;  %v3631_v30 = vld [vmem:[%s5960_s6 + $0xf8] sm:$0xf0]  ;;  %2064 = vmatpush.bf16.msra.mxu3 %v3750_v45  ;;  %v3591_v45 = vld [vmem:[%s5960_s6 + $0xa8] sm:$0xf0] }
  0x9c   : > { %2039 = vmatpush.bf16.msra.mxu1 %v3614_v40  ;;  %v3634_v32 = vor.u32 %v4230_v28, %v3631_v30  ;;  %2052 = vmatpush.bf16.msra.mxu2 %v3678_v37  ;;  %v4222_v28 = vld [vmem:[%s5960_s6 + $0xb4] sm:$0xf]  ;;  %v3599_v30 = vld [vmem:[%s5960_s6 + $0xb8] sm:$0xf0] }
  0x9d   : > { %v3602_v36 = vor.u32 %v4222_v28, %v3599_v30  ;;  %v4240_v30 = vld [vmem:[%s5960_s6 + $0x144] sm:$0xf] }
  0x9f   : > { %2027 = vmatpush.bf16.msra.mxu0 %v3542_v39  ;;  %v3551_v39 = vld [vmem:[%s5960_s6 + $0x58] sm:$0xf0] }
  0xa0   : > { %2040 = vmatpush.bf16.msra.mxu1 %v3606_v46  ;;  %v3554_v40 = vor.u32 %v4210_v38, %v3551_v39  ;;  %v3623_v46 = vld [vmem:[%s5960_s6 + $0xe8] sm:$0xf0]  ;;  %v4202_v38 = vld [vmem:[%s5960_s6 + $0x14] sm:$0xf]  ;;  %v3519_v39 = vld [vmem:[%s5960_s6 + $0x18] sm:$0xf0] }
  0xa1   : > { %v3522_v41 = vor.u32 %v4202_v38, %v3519_v39  ;;  %v4258_v38 = vld [vmem:[%s5960_s6 + $0x1d4] sm:$0xf]  ;;  %v3743_v39 = vld [vmem:[%s5960_s6 + $0x1d8] sm:$0xf0] }
  0xa3   : > { %2028 = vmatpush.bf16.msra.mxu0 %v3534_v43  ;;  %v4228_v43 = vld [vmem:[%s5960_s6 + $0xe4] sm:$0xf] }
  0xa4   : > { %2041 = vmatpush.bf16.msra.mxu1 %v3598_v52  ;;  %v3626_v47 = vor.u32 %v4228_v43, %v3623_v46  ;;  %v3670_v52 = vor.u32 %v4241_v49, %v3669_v48  ;;  %v4220_v43 = vld [vmem:[%s5960_s6 + $0xa4] sm:$0xf]  ;;  %v3637_v48 = vld [vmem:[%s5960_s6 + $0x100] sm:$0xf]  ;;  %v4233_v49 = vld [vmem:[%s5960_s6 + $0x104] sm:$0xf0] }
  0xa6   : > { %2053 = vmatpush.bf16.msra.mxu2 %v3670_v52  ;;  %v3638_v52 = vor.u32 %v4233_v49, %v3637_v48 }
  0xa7   : > { %2029 = vmatpush.bf16.msra.mxu0 %v3526_v51 }
  0xa8   : > { %2042 = vmatpush.bf16.msra.mxu1 %v3590_v60  ;;  %v3742_v60 = vor.u32 %v4259_v57, %v3741_v56  ;;  %v3695_v56 = vld [vmem:[%s5960_s6 + $0x178] sm:$0xf0] }
  0xaa   : > { %2065 = vmatpush.bf16.msra.mxu3 %v3742_v60  ;;  %2054 = vmatpush.bf16.msra.mxu2 %v3662_v4  ;;  %v3709_v60 = vld [vmem:[%s5960_s6 + $0x190] sm:$0xf]  ;;  %v4244_v4 = vld [vmem:[%s5960_s6 + $0x164] sm:$0xf] }
  0xab   : > { %2030 = vmatpush.bf16.msra.mxu0 %v3518_v55  ;;  %v3546_v55 = vor.u32 %v4208_v50, %v3543_v53  ;;  %v4200_v50 = vld [vmem:[%s5960_s6 + $0x4] sm:$0xf]  ;;  %v3511_v53 = vld [vmem:[%s5960_s6 + $0x8] sm:$0xf0] }
  0xac   : > { %2043 = vmatpush.bf16.msra.mxu1 %v3582_v9  ;;  %v4257_v9 = vld [vmem:[%s5960_s6 + $0x1c4] sm:$0xf0]  ;;  %v3514_v57 = vor.u32 %v4200_v50, %v3511_v53  ;;  %v4256_v53 = vld [vmem:[%s5960_s6 + $0x1c4] sm:$0xf] }
  0xae   : > { %2055 = vmatpush.bf16.msra.mxu2 %v3654_v22  ;;  %v4242_v22 = vld [vmem:[%s5960_s6 + $0x154] sm:$0xf] }
  0xaf   : > { %2031 = vmatpush.bf16.msra.mxu0 %v3510_v7  ;;  %v3538_v7 = vor.u32 %v4206_v3, %v3535_v5  ;;  %v5578_v3 = vld [vmem:[%s5959_s5] sm:$0xf]  ;;  %v3687_v5 = vld [vmem:[%s5960_s6 + $0x168] sm:$0xf0] }
  0xb0   : > { %2044 = vmatpush.bf16.msra.mxu1 %v3574_v25  ;;  %v3530_v25 = vor.u32 %v4204_v20, %v3527_v23  ;;  %v3679_v23 = vld [vmem:[%s5960_s6 + $0x158] sm:$0xf0]  ;;  %v1614_v26 = vperm.slane %v5578_v3, 0 }
  0xb3   : > { %2076 = vmatpush.bf16.msrb.mxu0 %v3570_v8  ;;  %v3733_v8 = vld [vmem:[%s5960_s6 + $0x1c0] sm:$0xf] }
  0xb4   : > { %2089 = vmatpush.bf16.msrb.mxu1 %v3634_v32  ;;  %v3645_v32 = vld [vmem:[%s5960_s6 + $0x110] sm:$0xf] }
  0xb5   : > { %v5379_v6 = vpop.f32.mrf.mxu1  ;;  %v3646_v37 = vor.u32 %v4235_v35, %v3645_v32  ;;  %v3671_v32 = vld [vmem:[%s5960_s6 + $0x148] sm:$0xf0] }
  0xb6   : > { %v5381_v10 = vpop.f32.mrf.mxu0 }
  0xb7   : > { %2077 = vmatpush.bf16.msrb.mxu0 %v3562_v24  ;;  %2056 = vmatpush.bf16.msra.mxu2 %v3646_v37  ;;  %v1100_v18 = vadd.f32 %v5379_v6, %v5381_v10  ;;  %v3682_v6 = vor.u32 %v4242_v22, %v3679_v23  ;;  %v4260_v10 = vld [vmem:[%s5960_s6 + $0x1e4] sm:$0xf] }
  0xb8   : > { %2090 = vmatpush.bf16.msrb.mxu1 %v3626_v47  ;;  %v3594_v47 = vor.u32 %v4220_v43, %v3591_v45  ;;  %v4248_v23 = vld [vmem:[%s5960_s6 + $0x184] sm:$0xf] }
  0xb9   : > { %v5383_v11 = vpop.f32.mrf.mxu2 }
  0xbb   : > { %2078 = vmatpush.bf16.msrb.mxu0 %v3554_v40  ;;  %v3717_v40 = vld [vmem:[%s5960_s6 + $0x1a0] sm:$0xf]  ;;  %2057 = vmatpush.bf16.msra.mxu2 %v3638_v52 }
  0xbc   : > { %v5385_v12 = vpop.f32.mrf.mxu3  ;;  %2091 = vmatpush.bf16.msrb.mxu1 %v3618_v0  ;;  %v3718_v46 = vor.u32 %v4253_v42, %v3717_v40  ;;  %v3710_v0 = vor.u32 %v4251_v61, %v3709_v60  ;;  %v3746_v42 = vor.u32 %v4258_v38, %v3743_v39  ;;  %v3655_v60 = vld [vmem:[%s5960_s6 + $0x128] sm:$0xf0]  ;;  %v1617_v39 = vperm.slane %v5578_v3, 3 }
  0xbd   : > { %v1101_v13 = vpop.f32.mrf.mxu1  ;;  %v1126_v37 = vadd.f32 %v5385_v12, %v5383_v11  ;;  %v4238_v11 = vld [vmem:[%s5960_s6 + $0x134] sm:$0xf]  ;;  %v3663_v12 = vld [vmem:[%s5960_s6 + $0x138] sm:$0xf0] }
  0xbe   : > { %v1088_v14 = vpop.f32.mrf.mxu0  ;;  %v4224_v13 = vld [vmem:[%s5960_s6 + $0xc4] sm:$0xf]  ;;  %v3666_v50 = vor.u32 %v4238_v11, %v3663_v12  ;;  %v4267_v12 = vld [vmem:[%s5962_s8 + $0x18] sm:$0xff] }
  0xbf   : > { %2079 = vmatpush.bf16.msrb.mxu0 %v3546_v55  ;;  %v4246_v55 = vld [vmem:[%s5960_s6 + $0x174] sm:$0xf]  ;;  %v4268_v11 = vld [vmem:[%s5962_s8 + $0x20] sm:$0xff] }
  0xc0   : > { %v3698_v58 = vor.u32 %v4246_v55, %v3695_v56  ;;  %v3735_v55 = vld [vmem:[%s5960_s6 + $0x1c8] sm:$0xf0] }
  0xc1   : > { %v1114_v15 = vpop.f32.mrf.mxu2  ;;  %v3738_v56 = vor.u32 %v4256_v53, %v3735_v55 }
  0xc2   : > { %v3734_v15 = vor.u32 %v4257_v9, %v3733_v8  ;;  %2102 = vmatpush.bf16.msrb.mxu2 %v3698_v58  ;;  %v3701_v8 = vld [vmem:[%s5960_s6 + $0x180] sm:$0xf]  ;;  %v4249_v9 = vld [vmem:[%s5960_s6 + $0x184] sm:$0xf0]  ;;  %v4236_v58 = vld [vmem:[%s5960_s6 + $0x124] sm:$0xf] }
  0xc3   : > { %2080 = vmatpush.bf16.msrb.mxu0 %v3538_v7  ;;  %v3690_v7 = vor.u32 %v4244_v4, %v3687_v5  ;;  %v3658_v61 = vor.u32 %v4236_v58, %v3655_v60  ;;  %v4234_v5 = vld [vmem:[%s5960_s6 + $0x114] sm:$0xf]  ;;  %v4264_v58 = vld [vmem:[%s5962_s8] sm:$0xff] }
  0xc4   : > { %v1127_v16 = vpop.f32.mrf.mxu3  ;;  %2066 = vmatpush.bf16.msra.mxu3 %v3734_v15  ;;  %v3575_v15 = vld [vmem:[%s5960_s6 + $0x88] sm:$0xf0]  ;;  %v4276_v60 = vld [vmem:[%s5962_s8 + $0x60] sm:$0xff] }
  0xc5   : > { %v3607_v16 = vld [vmem:[%s5960_s6 + $0xc8] sm:$0xf0] }
  0xc6   : > { %v3610_v17 = vor.u32 %v4224_v13, %v3607_v16  ;;  %v4216_v13 = vld [vmem:[%s5960_s6 + $0x84] sm:$0xf]  ;;  %v4262_v16 = vld [vmem:[%s5960_s6 + $0x1f4] sm:$0xf]  ;;  %2103 = vmatpush.bf16.msrb.mxu2 %v3690_v7  ;;  %v3647_v7 = vld [vmem:[%s5960_s6 + $0x118] sm:$0xf0] }
  0xc7   : > { %2081 = vmatpush.bf16.msrb.mxu0 %v3530_v25  ;;  %v3578_v19 = vor.u32 %v4216_v13, %v3575_v15  ;;  %v3719_v15 = vld [vmem:[%s5960_s6 + $0x1a8] sm:$0xf0] }
  0xc8   : > { %2092 = vmatpush.bf16.msrb.mxu1 %v3610_v17  ;;  %2067 = vmatpush.bf16.msra.mxu3 %v3726_v29  ;;  %v3759_v17 = vld [vmem:[%s5960_s6 + $0x1f8] sm:$0xf0]  ;;  %v3754_v29 = vor.u32 %v4260_v10, %v3751_v27 }
  0xc9   : > { %v3762_v20 = vor.u32 %v4262_v16, %v3759_v17  ;;  %v4232_v16 = vld [vmem:[%s5960_s6 + $0x104] sm:$0xf]  ;;  %v3639_v17 = vld [vmem:[%s5960_s6 + $0x108] sm:$0xf0] }
  0xca   : > { %2104 = vmatpush.bf16.msrb.mxu2 %v3682_v6 }
  0xcb   : > { %2082 = vmatpush.bf16.msrb.mxu0 %v3522_v41 }
  0xcc   : > { %2093 = vmatpush.bf16.msrb.mxu1 %v3602_v36  ;;  %2068 = vmatpush.bf16.msra.mxu3 %v3718_v46  ;;  %v3674_v36 = vor.u32 %v4240_v30, %v3671_v32  ;;  %v1615_v46 = vperm.slane %v5578_v3, 1 }
  0xce   : > { %v5440_v44 = vpop.f32.mrf.mxu0  ;;  %2105 = vmatpush.bf16.msrb.mxu2 %v3674_v36 }
  0xcf   : > { %2083 = vmatpush.bf16.msrb.mxu0 %v3514_v57 }
  0xd0   : > { %2094 = vmatpush.bf16.msrb.mxu1 %v3594_v47  ;;  %2069 = vmatpush.bf16.msra.mxu3 %v3710_v0  ;;  %v4254_v0 = vld [vmem:[%s5960_s6 + $0x1b4] sm:$0xf] }
  0xd1   : > { %v5417_v31 = vpop.f32.mrf.mxu1 }
  0xd2   : > { %2106 = vmatpush.bf16.msrb.mxu2 %v3666_v50  ;;  %v4266_v50 = vld [vmem:[%s5962_s8 + $0x10] sm:$0xff] }
  0xd5   : > { %v5454_v51 = vpop.f32.mrf.mxu2 }
  0xd6   : > { %v1140_v14 = vpop.f32.mrf.mxu0  ;;  %2107 = vmatpush.bf16.msrb.mxu2 %v3658_v61 }
  0xd7   : > { %v3702_v14 = vor.u32 %v4249_v9, %v3701_v8  ;;  %v4252_v8 = vld [vmem:[%s5960_s6 + $0x1a4] sm:$0xf] }
  0xd8   : > { %v5459_v54 = vpop.f32.mrf.mxu3 }
  0xd9   : > { %v1153_v62 = vpop.f32.mrf.mxu1  ;;  %2070 = vmatpush.bf16.msra.mxu3 %v3702_v14  ;;  %v3650_v14 = vor.u32 %v4234_v5, %v3647_v7  ;;  %v1178_v32 = vadd.f32 %v5459_v54, %v5454_v51  ;;  %v4271_v51 = vld [vmem:[%s5962_s8 + $0x38] sm:$0xff]  ;;  %v4270_v54 = vld [vmem:[%s5962_s8 + $0x30] sm:$0xff]  ;;  %v4273_v5 = vld [vmem:[%s5962_s8 + $0x48] sm:$0xff] }
  0xda   : > { %v4218_v62 = vld [vmem:[%s5960_s6 + $0x94] sm:$0xf]  ;;  %v4272_v7 = vld [vmem:[%s5962_s8 + $0x40] sm:$0xff] }
  0xdb   : > { %v3586_v2 = vor.u32 %v4218_v62, %v3583_v1  ;;  %v3727_v1 = vld [vmem:[%s5960_s6 + $0x1b8] sm:$0xf0]  ;;  %2108 = vmatpush.bf16.msrb.mxu2 %v3650_v14 }
  0xdc   : > { %v3730_v4 = vor.u32 %v4254_v0, %v3727_v1  ;;  %v4275_v0 = vld [vmem:[%s5962_s8 + $0x58] sm:$0xff]  ;;  %v4274_v1 = vld [vmem:[%s5962_s8 + $0x50] sm:$0xff] }
  0xdd   : > { %v1166_v21 = vpop.f32.mrf.mxu2  ;;  %2095 = vmatpush.bf16.msrb.mxu1 %v3586_v2  ;;  %2115 = vmatpush.bf16.msrb.mxu3 %v3762_v20  ;;  %v3711_v20 = vld [vmem:[%s5960_s6 + $0x198] sm:$0xf0] }
  0xde   : > { %v4287_v14 = vld [vmem:[%s5964_s10 + $0x38] sm:$0xff] }
  0xe0   : > { %v1179_v24 = vpop.f32.mrf.mxu3 }
  0xe1   : > { %2096 = vmatpush.bf16.msrb.mxu1 %v3578_v19  ;;  %2116 = vmatpush.bf16.msrb.mxu3 %v3754_v29  ;;  %v4250_v19 = vld [vmem:[%s5960_s6 + $0x194] sm:$0xf] }
  0xe2   : > { %v3714_v22 = vor.u32 %v4250_v19, %v3711_v20 }
  0xe5   : > { %2117 = vmatpush.bf16.msrb.mxu3 %v3746_v42 }
  0xe9   : > { %2118 = vmatpush.bf16.msrb.mxu3 %v3738_v56  ;;  %v4265_v56 = vld [vmem:[%s5962_s8 + $0x8] sm:$0xff] }
  0xed   : > { %2119 = vmatpush.bf16.msrb.mxu3 %v3730_v4 }
  0xee   : > { %v1517_v21 = vpop.f32.mrf.mxu0 }
  0xef   : > { %v1518_v24 = vadd.f32 %v1517_v21, %v1100_v18  ;;  %v3722_v18 = vor.u32 %v4252_v8, %v3719_v15  ;;  %v3642_v21 = vor.u32 %v4232_v16, %v3639_v17  ;;  %v1698_v8 = vld [vmem:[%s5961_s7] sm:$0x3]  ;;  %v4286_v16 = vld [vmem:[%s5964_s10 + $0x30] sm:$0xff] }
  0xf1   : > { %v1530_v25 = vpop.f32.mrf.mxu1  ;;  %2120 = vmatpush.bf16.msrb.mxu3 %v3722_v18  ;;  %2109 = vmatpush.bf16.msrb.mxu2 %v3642_v21 }
  0xf2   : > { %v1531_v28 = vadd.f32 %v1530_v25, %v1518_v24  ;;  %v3703_v24 = vld [vmem:[%s5960_s6 + $0x188] sm:$0xf0] }
  0xf3   : > { %v3706_v25 = vor.u32 %v4248_v23, %v3703_v24 }
  0xf4   : > { %v1622_v35 = vadd.f32 %v1614_v26, %v1531_v28  ;;  %v1152_v26 = vadd.f32 %v5417_v31, %v5440_v44  ;;  %v1616_v28 = vperm.slane %v5578_v3, 2  ;;  %v4269_v3 = vld [vmem:[%s5962_s8 + $0x28] sm:$0xff] }
  0xf5   : > { %v1543_v41 = vpop.f32.mrf.mxu2  ;;  %2121 = vmatpush.bf16.msrb.mxu3 %v3714_v22 }
  0xf6   : > { %v1626_v40 = vmax.f32 %v1622_v35, 0.0  ;;  %v1544_v43 = vadd.f32 %v1543_v41, %v1126_v37  ;;  %v1519_v47 = vpop.f32.mrf.mxu0 }
  0xf8   : > { %v1556_v45 = vpop.f32.mrf.mxu3  ;;  %v1630_v48 = vpack.c.bf16 %v1626_v40, %v1626_v40 }
  0xf9   : > { %v1532_v49 = vpop.f32.mrf.mxu1  ;;  %v1557_v52 = vadd.f32 %v1556_v45, %v1544_v43  ;;  %2122 = vmatpush.bf16.msrb.mxu3 %v3706_v25  ;;  %v1701_v25 = vperm.slane %v1698_v8, 1 }
  0xfa   : > { %2032 = vmatmul.bf16.vlgmr.msra.gmra.mxu0 %v1630_v48 }
  0xfb   : > { %v1623_v57 = vadd.f32 %v1615_v46, %v1557_v52  ;;  %2264 = vmatpush.bf16.msra.mxu0 %v4271_v51  ;;  %v4278_v52 = vld [vmem:[%s5962_s8 + $0x70] sm:$0xff]  ;;  %v4303_v51 = vld [vmem:[%s5966_s12 + $0x78] sm:$0xff] }
  0xfd   : > { %v1627_v62 = vmax.f32 %v1623_v57, 0.0  ;;  %v1545_v2 = vpop.f32.mrf.mxu2  ;;  %v4277_v57 = vld [vmem:[%s5962_s8 + $0x68] sm:$0xff] }
  0xff   : > { %v1631_v9 = vpack.c.bf16 %v1627_v62, %v1627_v62  ;;  %2265 = vmatpush.bf16.msra.mxu0 %v4270_v54  ;;  %v4309_v54 = vld [vmem:[%s5967_s13 + $0x28] sm:$0xff] }
 0x100   : > { %v1558_v13 = vpop.f32.mrf.mxu3 }
 0x101   : > { %2045 = vmatmul.bf16.vlgmr.msra.gmra.mxu1 %v1631_v9  ;;  %v1700_v13 = vperm.slane %v1698_v8, 0  ;;  %v4290_v8 = vld [vmem:[%s5966_s12 + $0x10] sm:$0xff] }
 0x103   : > { %2266 = vmatpush.bf16.msra.mxu0 %v4269_v3  ;;  %v4317_v3 = vld [vmem:[%s5967_s13 + $0x68] sm:$0xff] }
 0x107   : > { %2267 = vmatpush.bf16.msra.mxu0 %v4268_v11  ;;  %v4294_v11 = vld [vmem:[%s5966_s12 + $0x30] sm:$0xff] }
 0x10a   : > { %2084 = vmatmul.bf16.vlgmr.msrb.gmra.mxu0 %v1630_v48  ;;  %v4279_v48 = vld [vmem:[%s5962_s8 + $0x78] sm:$0xff] }
 0x10b   : > { %2277 = vmatpush.bf16.msra.mxu1 %v4279_v48  ;;  %2268 = vmatpush.bf16.msra.mxu0 %v4267_v12  ;;  %v4302_v12 = vld [vmem:[%s5966_s12 + $0x70] sm:$0xff] }
 0x10e   : > { %v1569_v6 = vpop.f32.mrf.mxu0 }
 0x10f   : > { %v1570_v10 = vadd.f32 %v1569_v6, %v1152_v26  ;;  %v1582_v27 = vpop.f32.mrf.mxu1  ;;  %2278 = vmatpush.bf16.msra.mxu1 %v4278_v52  ;;  %2269 = vmatpush.bf16.msra.mxu0 %v4266_v50  ;;  %v4316_v50 = vld [vmem:[%s5967_s13 + $0x60] sm:$0xff]  ;;  %v4293_v52 = vld [vmem:[%s5966_s12 + $0x28] sm:$0xff] }
 0x111   : > { %v1583_v29 = vadd.f32 %v1582_v27, %v1570_v10  ;;  %2097 = vmatmul.bf16.vlgmr.msrb.gmra.mxu1 %v1631_v9 }
 0x113   : > { %v1624_v30 = vadd.f32 %v1616_v28, %v1583_v29  ;;  %2270 = vmatpush.bf16.msra.mxu0 %v4265_v56  ;;  %2279 = vmatpush.bf16.msra.mxu1 %v4277_v57  ;;  %v4315_v56 = vld [vmem:[%s5967_s13 + $0x58] sm:$0xff]  ;;  %v4292_v57 = vld [vmem:[%s5966_s12 + $0x20] sm:$0xff] }
 0x115   : > { %v1628_v35 = vmax.f32 %v1624_v30, 0.0  ;;  %v1595_v36 = vpop.f32.mrf.mxu2 }
 0x116   : > { %v1596_v37 = vadd.f32 %v1595_v36, %v1178_v32  ;;  %v1608_v38 = vpop.f32.mrf.mxu3  ;;  %v1571_v40 = vpop.f32.mrf.mxu0 }
 0x117   : > { %v1632_v31 = vpack.c.bf16 %v1628_v35, %v1628_v35  ;;  %v1584_v44 = vpop.f32.mrf.mxu1  ;;  %2271 = vmatpush.bf16.msra.mxu0 %v4264_v58  ;;  %2280 = vmatpush.bf16.msra.mxu1 %v4276_v60  ;;  %v4283_v40 = vld [vmem:[%s5964_s10 + $0x18] sm:$0xff]  ;;  %v4300_v58 = vld [vmem:[%s5966_s12 + $0x60] sm:$0xff] }
 0x118   : > { %v1609_v41 = vadd.f32 %v1608_v38, %v1596_v37  ;;  %v4285_v38 = vld [vmem:[%s5964_s10 + $0x28] sm:$0xff] }
 0x119   : > { %2058 = vmatmul.bf16.vlgmr.msra.gmra.mxu2 %v1632_v31  ;;  %v4281_v44 = vld [vmem:[%s5964_s10 + $0x8] sm:$0xff] }
 0x11a   : > { %v1625_v42 = vadd.f32 %v1617_v39, %v1609_v41  ;;  %2360 = vmatpush.bf16.msra.mxu2 %v4287_v14  ;;  %v4284_v39 = vld [vmem:[%s5964_s10 + $0x20] sm:$0xff] }
 0x11b   : > { %2281 = vmatpush.bf16.msra.mxu1 %v4275_v0  ;;  %v4280_v41 = vld [vmem:[%s5964_s10] sm:$0xff] }
 0x11c   : > { %v1629_v43 = vmax.f32 %v1625_v42, 0.0  ;;  %v4311_v42 = vld [vmem:[%s5967_s13 + $0x38] sm:$0xff]  ;;  %v4348_v0 = vld [vmem:[%s5963_s9] ss:$0 sm:$0xff] }
 0x11d   : > { %v1597_v45 = vpop.f32.mrf.mxu2 }
 0x11e   : > { %v1633_v46 = vpack.c.bf16 %v1629_v43, %v1629_v43  ;;  %v1610_v47 = vpop.f32.mrf.mxu3  ;;  %2361 = vmatpush.bf16.msra.mxu2 %v4286_v16  ;;  %v4319_v43 = vld [vmem:[%s5967_s13 + $0x78] sm:$0xff]  ;;  %v4310_v45 = vld [vmem:[%s5967_s13 + $0x30] sm:$0xff]  ;;  %v4312_v16 = vld [vmem:[%s5967_s13 + $0x40] sm:$0xff] }
 0x11f   : > { %2282 = vmatpush.bf16.msra.mxu1 %v4274_v1  ;;  %2547 = vmatpush.bf16.msrb.mxu0 %v4319_v43  ;;  %v4295_v47 = vld [vmem:[%s5966_s12 + $0x38] sm:$0xff] }
 0x120   : > { %2071 = vmatmul.bf16.vlgmr.msra.gmra.mxu3 %v1633_v46  ;;  %v4291_v1 = vld [vmem:[%s5966_s12 + $0x18] sm:$0xff] }
 0x121   : > { %2534 = vmatpush.bf16.msra.mxu3 %v4311_v42  ;;  %v4331_v43 = vld [vmem:[%s5968_s14 + $0x58] sm:$0xff] }
 0x122   : > { %2362 = vmatpush.bf16.msra.mxu2 %v4285_v38 }
 0x123   : > { %2283 = vmatpush.bf16.msra.mxu1 %v4273_v5  ;;  %v4313_v5 = vld [vmem:[%s5967_s13 + $0x48] sm:$0xff] }
 0x125   : > { %2535 = vmatpush.bf16.msra.mxu3 %v4310_v45  ;;  %v4322_v45 = vld [vmem:[%s5968_s14 + $0x10] sm:$0xff] }
 0x126   : > { %2363 = vmatpush.bf16.msra.mxu2 %v4284_v39  ;;  %v4324_v39 = vld [vmem:[%s5968_s14 + $0x20] sm:$0xff] }
 0x127   : > { %2284 = vmatpush.bf16.msra.mxu1 %v4272_v7 }
 0x129   : > { %2110 = vmatmul.bf16.vlgmr.msrb.gmra.mxu2 %v1632_v31  ;;  %v4282_v31 = vld [vmem:[%s5964_s10 + $0x10] sm:$0xff]  ;;  %2536 = vmatpush.bf16.msra.mxu3 %v4309_v54  ;;  %v4320_v54 = vld [vmem:[%s5968_s14] sm:$0xff] }
 0x12a   : > { %2364 = vmatpush.bf16.msra.mxu2 %v4283_v40 }
 0x12b   : > { %2656 = vmatpush.bf16.msrb.mxu1 %v4295_v47  ;;  %v4321_v47 = vld [vmem:[%s5968_s14 + $0x8] sm:$0xff] }
 0x12e   : > { %2365 = vmatpush.bf16.msra.mxu2 %v4282_v31  ;;  %v4332_v31 = vld [vmem:[%s5968_s14 + $0x60] sm:$0xff] }
 0x12f   : > { %2657 = vmatpush.bf16.msrb.mxu1 %v4294_v11  ;;  %v4336_v11 = vld [vmem:[%s5969_s15] sm:$0xff] }
 0x130   : > { %2123 = vmatmul.bf16.vlgmr.msrb.gmra.mxu3 %v1633_v46  ;;  %v4318_v46 = vld [vmem:[%s5967_s13 + $0x70] sm:$0xff] }
 0x131   : > { %2548 = vmatpush.bf16.msrb.mxu0 %v4318_v46  ;;  %v4330_v46 = vld [vmem:[%s5968_s14 + $0x50] sm:$0xff] }
 0x132   : > { %2366 = vmatpush.bf16.msra.mxu2 %v4281_v44  ;;  %v4337_v44 = vld [vmem:[%s5969_s15 + $0x8] sm:$0xff] }
 0x133   : > { %2658 = vmatpush.bf16.msrb.mxu1 %v4293_v52 }
 0x135   : > { %2549 = vmatpush.bf16.msrb.mxu0 %v4317_v3  ;;  %v4328_v3 = vld [vmem:[%s5968_s14 + $0x40] sm:$0xff] }
 0x136   : > { %2367 = vmatpush.bf16.msra.mxu2 %v4280_v41  ;;  %v4323_v41 = vld [vmem:[%s5968_s14 + $0x18] sm:$0xff] }
 0x137   : > { %2659 = vmatpush.bf16.msrb.mxu1 %v4292_v57 }
 0x139   : > { %2550 = vmatpush.bf16.msrb.mxu0 %v4316_v50 }
 0x13a   : > { %2669 = vmatpush.bf16.msrb.mxu2 %v4303_v51  ;;  %v4329_v51 = vld [vmem:[%s5968_s14 + $0x48] sm:$0xff] }
 0x13b   : > { %2660 = vmatpush.bf16.msrb.mxu1 %v4291_v1 }
 0x13d   : > { %2551 = vmatpush.bf16.msrb.mxu0 %v4315_v56 }
 0x13e   : > { %2670 = vmatpush.bf16.msrb.mxu2 %v4302_v12 }
 0x13f   : > { %2661 = vmatpush.bf16.msrb.mxu1 %v4290_v8 }
 0x177   : > { %v2033_v49 = vpop.f32.mrf.mxu0 }
 0x178   : > { %v2034_v17 = vadd.f32 %v2033_v49, %v1700_v13  ;;  %v4308_v49 = vld [vmem:[%s5967_s13 + $0x20] sm:$0xff] }
 0x179   : > { %2537 = vmatpush.bf16.msra.mxu3 %v4308_v49 }
 0x17e   : > { %v2046_v53 = vpop.f32.mrf.mxu1 }
 0x17f   : > { %v2035_v55 = vpop.f32.mrf.mxu0  ;;  %v2047_v18 = vadd.f32 %v2046_v53, %v2034_v17  ;;  %v4301_v53 = vld [vmem:[%s5966_s12 + $0x68] sm:$0xff] }
 0x180   : > { %v4307_v55 = vld [vmem:[%s5967_s13 + $0x18] sm:$0xff]  ;;  %2671 = vmatpush.bf16.msrb.mxu2 %v4301_v53 }
 0x181   : > { %2538 = vmatpush.bf16.msra.mxu3 %v4307_v55 }
 0x184   : > { %2672 = vmatpush.bf16.msrb.mxu2 %v4300_v58 }
 0x186   : > { %v2048_v61 = vpop.f32.mrf.mxu1 }
 0x187   : > { %v2085_v62 = vpop.f32.mrf.mxu0  ;;  %v4306_v61 = vld [vmem:[%s5967_s13 + $0x10] sm:$0xff] }
 0x188   : > { %v2086_v10 = vadd.f32 %v2085_v62, %v1701_v25  ;;  %v4314_v62 = vld [vmem:[%s5967_s13 + $0x50] sm:$0xff]  ;;  %2539 = vmatpush.bf16.msra.mxu3 %v4306_v61 }
 0x189   : > { %2552 = vmatpush.bf16.msrb.mxu0 %v4314_v62 }
 0x18d   : > { %2553 = vmatpush.bf16.msrb.mxu0 %v4313_v5 }
 0x18e   : > { %v2098_v2 = vpop.f32.mrf.mxu1 }
 0x18f   : > { %v2087_v4 = vpop.f32.mrf.mxu0  ;;  %v2099_v27 = vadd.f32 %v2098_v2, %v2086_v10  ;;  %v4299_v2 = vld [vmem:[%s5966_s12 + $0x58] sm:$0xff] }
 0x190   : > { %v4305_v4 = vld [vmem:[%s5967_s13 + $0x8] sm:$0xff]  ;;  %2673 = vmatpush.bf16.msrb.mxu2 %v4299_v2 }
 0x191   : > { %2540 = vmatpush.bf16.msra.mxu3 %v4305_v4  ;;  %2554 = vmatpush.bf16.msrb.mxu0 %v4312_v16 }
 0x196   : > { %v2100_v9 = vpop.f32.mrf.mxu1 }
 0x197   : > { %v4298_v9 = vld [vmem:[%s5966_s12 + $0x50] sm:$0xff] }
 0x198   : > { %2674 = vmatpush.bf16.msrb.mxu2 %v4298_v9 }
 0x19c   : > { %v2059_v15 = vpop.f32.mrf.mxu2 }
 0x19d   : > { %v2060_v19 = vadd.f32 %v2059_v15, %v2047_v18  ;;  %v4304_v15 = vld [vmem:[%s5967_s13] sm:$0xff]  ;;  %v4327_v18 = vld [vmem:[%s5968_s14 + $0x38] sm:$0xff] }
 0x19e   : > { %2541 = vmatpush.bf16.msra.mxu3 %v4304_v15 }
 0x1a1   : > { %2542 = vmatmul.bf16.vlgmr.msra.gmra.mxu3 %v5106_v59  ;;  %v4333_v59 = vld [vmem:[%s5968_s14 + $0x68] sm:$0xff] }
 0x1a2   : > { %2810 = vmatpush.bf16.msrb.mxu3 %v4327_v18 }
 0x1a3   : > { %v2072_v20 = vpop.f32.mrf.mxu3 }
 0x1a4   : > { %v2073_v21 = vadd.f32 %v2072_v20, %v2060_v19  ;;  %v2061_v22 = vpop.f32.mrf.mxu2  ;;  %v4352_v19 = vld [vmem:[%s5046_s29] sm:$0xff] }
 0x1a5   : > { %v614_v20 = vunpack.c.l.bf16 %v4352_v19 }
 0x1a6   : > { %v2128_v23 = vmax.f32 %v2073_v21, 0.0  ;;  %v4353_v21 = vld [vmem:[%s4775_s2] sm:$0xff] }
 0x1a7   : > { %v616_v22 = vunpack.c.l.bf16 %v4353_v21  ;;  %v617_v38 = vunpack.c.h.bf16 %v4353_v21 }
 0x1a8   : > { %v2130_v24 = vpack.c.bf16 %v2128_v23, %v2128_v23  ;;  %v4335_v23 = vld [vmem:[%s5968_s14 + $0x78] sm:$0xff] }
 0x1a9   : > { %v618_v10 = vmul.f32 %v616_v22, %v614_v20  ;;  %v2903_v22 = vld [vmem:[%s606_s22] sm:$0xff] }
 0x1aa   : > { %2272 = vmatmul.bf16.vlgmr.msra.gmra.mxu0 %v2130_v24  ;;  %v4289_v24 = vld [vmem:[%s5966_s12 + $0x8] sm:$0xff] }
 0x1ab   : > { %v2074_v26 = vpop.f32.mrf.mxu3  ;;  %2823 = vmatpush.bf16.msra.mxu0 %v4335_v23  ;;  %2662 = vmatpush.bf16.msrb.mxu1 %v4289_v24 }
 0x1ac   : > { %v2111_v6 = vpop.f32.mrf.mxu2  ;;  %v4297_v26 = vld [vmem:[%s5966_s12 + $0x48] sm:$0xff] }
 0x1ad   : > { %v2112_v28 = vadd.f32 %v2111_v6, %v2099_v27  ;;  %v4326_v6 = vld [vmem:[%s5968_s14 + $0x30] sm:$0xff]  ;;  %2675 = vmatpush.bf16.msrb.mxu2 %v4297_v26 }
 0x1ae   : > { %2811 = vmatpush.bf16.msrb.mxu3 %v4326_v6 }
 0x1b3   : > { %v2124_v29 = vpop.f32.mrf.mxu3 }
 0x1b4   : > { %v2125_v30 = vadd.f32 %v2124_v29, %v2112_v28  ;;  %v2113_v32 = vpop.f32.mrf.mxu2  ;;  %v4334_v28 = vld [vmem:[%s5968_s14 + $0x70] sm:$0xff]  ;;  %v4288_v29 = vld [vmem:[%s5966_s12] sm:$0xff] }
 0x1b5   : > { %v4296_v32 = vld [vmem:[%s5966_s12 + $0x40] sm:$0xff]  ;;  %2824 = vmatpush.bf16.msra.mxu0 %v4334_v28  ;;  %2663 = vmatpush.bf16.msrb.mxu1 %v4288_v29 }
 0x1b6   : > { %v2129_v35 = vmax.f32 %v2125_v30, 0.0  ;;  %v4339_v30 = vld [vmem:[%s5969_s15 + $0x18] sm:$0xff]  ;;  %2676 = vmatpush.bf16.msrb.mxu2 %v4296_v32 }
 0x1b8   : > { %v2131_v36 = vpack.c.bf16 %v2129_v35, %v2129_v35  ;;  %v4325_v35 = vld [vmem:[%s5968_s14 + $0x28] sm:$0xff] }
 0x1b9   : > { %2812 = vmatpush.bf16.msrb.mxu3 %v4325_v35  ;;  %2825 = vmatpush.bf16.msra.mxu0 %v4333_v59 }
 0x1ba   : > { %2285 = vmatmul.bf16.vlgmr.msra.gmra.mxu1 %v2131_v36  ;;  %2555 = vmatmul.bf16.vlgmr.msrb.gmra.mxu0 %v5117_v63  ;;  %v620_v36 = vpack.c.bf16 %v618_v10, %v618_v10  ;;  %v4338_v63 = vld [vmem:[%s5969_s15 + $0x10] sm:$0xff] }
 0x1bb   : > { %v2126_v37 = vpop.f32.mrf.mxu3  ;;  %2878 = vmatpush.bf16.msra.mxu1 %v4339_v30 }
 0x1bc   : > { %v615_v37 = vunpack.c.h.bf16 %v4352_v19 }
 0x1bd   : > { %2813 = vmatpush.bf16.msrb.mxu3 %v4324_v39  ;;  %2826 = vmatpush.bf16.msra.mxu0 %v4332_v31 }
 0x1be   : > { %v619_v40 = vmul.f32 %v617_v38, %v615_v37 }
 0x1bf   : > { %2879 = vmatpush.bf16.msra.mxu1 %v4338_v63 }
 0x1c0   : > { %v621_v42 = vpack.c.bf16 %v619_v40, %v619_v40 }
 0x1c1   : > { %2814 = vmatpush.bf16.msrb.mxu3 %v4323_v41  ;;  %2827 = vmatpush.bf16.msra.mxu0 %v4331_v43 }
 0x1c3   : > { %2880 = vmatpush.bf16.msra.mxu1 %v4337_v44 }
 0x1c5   : > { %2815 = vmatpush.bf16.msrb.mxu3 %v4322_v45  ;;  %2828 = vmatpush.bf16.msra.mxu0 %v4330_v46 }
 0x1c7   : > { %2881 = vmatpush.bf16.msra.mxu1 %v4336_v11 }
 0x1c9   : > { %2816 = vmatpush.bf16.msrb.mxu3 %v4321_v47  ;;  %2829 = vmatpush.bf16.msra.mxu0 %v4329_v51 }
 0x1ca   : > { %2664 = vmatmul.bf16.vlgmr.msrb.gmra.mxu1 %v620_v36 }
 0x1cd   : > { %2817 = vmatpush.bf16.msrb.mxu3 %v4320_v54  ;;  %2830 = vmatpush.bf16.msra.mxu0 %v4328_v3 }
 0x1d0   : > { %2818 = vmatmul.bf16.vlgmr.msrb.gmra.mxu3 %v4799_v33  ;;  %2831 = vmatmul.bf16.vlgmr.msra.gmra.mxu0 %v4801_v34 }
 0x224   : > { %v2543_v52 = vpop.f32.mrf.mxu3 }
 0x227   : > { %v2273_v48 = vpop.f32.mrf.mxu0 }
 0x228   : > { %v2274_v7 = vadd.f32 %v4348_v0, %v2273_v48  ;;  %v4349_v48 = vld [vmem:[%s5965_s11] ss:$0 sm:$0xff] }
 0x22f   : > { %v2275_v60 = vpop.f32.mrf.mxu0 }
 0x230   : > { %v2545_v60 = vpop.f32.mrf.mxu3 }
 0x237   : > { %v2286_v13 = vpop.f32.mrf.mxu1  ;;  %v2556_v12 = vpop.f32.mrf.mxu0 }
 0x238   : > { %v2287_v14 = vadd.f32 %v2286_v13, %v2274_v7  ;;  %v2557_v56 = vadd.f32 %v2556_v12, %v2543_v52  ;;  %v4350_v13 = vld [vmem:[%s5970_s16] ss:$0 sm:$0xff] }
 0x23a   : > { %v2290_v17 = vmax.f32 %v2287_v14, 0.0 }
 0x23c   : > { %v2291_v25 = vpack.c.bf16 %v2290_v17, %v2290_v17  ;;  %v4351_v17 = vld [vmem:[%s5971_s17] ss:$0 sm:$0xff] }
 0x23e   : > { %2368 = vmatmul.bf16.vlgmr.msra.gmra.mxu2 %v2291_v25 }
 0x23f   : > { %v2288_v27 = vpop.f32.mrf.mxu1  ;;  %v2558_v33 = vpop.f32.mrf.mxu0 }
 0x247   : > { %v2665_v53 = vpop.f32.mrf.mxu1 }
 0x248   : > { %v2666_v34 = vadd.f32 %v2665_v53, %v2557_v56 }
 0x24d   : > { %v2832_v2 = vpop.f32.mrf.mxu0 }
 0x24e   : > { %2677 = vmatmul.bf16.vlgmr.msrb.gmra.mxu2 %v621_v42 }
 0x24f   : > { %v2667_v61 = vpop.f32.mrf.mxu1 }
 0x253   : > { %v2819_v4 = vpop.f32.mrf.mxu3 }
 0x254   : > { %v2833_v5 = vadd.f32 %v2832_v2, %v2819_v4 }
 0x255   : > { %v2834_v7 = vpop.f32.mrf.mxu0 }
 0x25b   : > { %v2821_v9 = vpop.f32.mrf.mxu3 }
 0x2c1   : > { %v2369_v49 = vpop.f32.mrf.mxu2 }
 0x2c2   : > { %v2370_v50 = vadd.f32 %v4349_v48, %v2369_v49 }
 0x2c4   : > { %v2373_v55 = vmax.f32 %v2370_v50, 0.0 }
 0x2c6   : > { %v2837_v57 = vpack.c.bf16 %v2373_v55, %v2373_v55 }
 0x2c8   : > { %4067 = vmatmul.msk.bf16.vlgmr.msra.gmra.mxu1 %vm2870_vm0, %v2837_v57 }
 0x2c9   : > { %v2371_v58 = vpop.f32.mrf.mxu2 }
 0x2d1   : > { %v2678_v62 = vpop.f32.mrf.mxu2 }
 0x2d2   : > { %v2679_v0 = vadd.f32 %v2678_v62, %v2666_v34 }
 0x2d4   : > { %v2836_v8 = vadd.f32 %v2833_v5, %v2679_v0 }
 0x2d9   : > { %v2680_v1 = vpop.f32.mrf.mxu2 }
 0x345   : > { %v2883_v14 = vpop.f32.mrf.mxu1 }
 0x346   : > { %v2887_v15 = vadd.f32 %v2883_v14, %v2836_v8 }
 0x348   : > { %v2892_v16 = vadd.f32 %v4350_v13, %v2887_v15 }
 0x34a   : > { %v2893_v18 = vmax.f32 %v2892_v16, 0.0 }
 0x34c   : > { %v2898_v19 = vmul.f32 %v4351_v17, %v2893_v18 }
 0x34d   : > { %v2885_v20 = vpop.f32.mrf.mxu1 }
 0x34e   : > { %v2900_v21 = vsel %vm2899_vm1, %v2898_v19, 0.0 }
 0x34f   : > { %2901 = vadd.xlane.f32.xlu0 %v2900_v21 }
 0x3c2   : > { %v2902_v23 = vpop.xlane.xlu0 %2901 }
 0x3c3   : > { %v2904_v24 = vadd.f32 %v2903_v22, %v2902_v23 }
 0x3c5   : > { %2906 = vst.msk [vmem:[%s610_s25] sm:$0xff] %vm2905_vm2, %v2904_v24 }
 0x3c6 PF: > { %s28_s27 = sadd.s32 1, %s4360_s27  }
 0x3c7   : > { %p25_p4 = scmp.ge.s32.totalorder %s28_s27, 4  }
 0x3c9   :  { %27 = sbr.rel (!%p25_p4) target bundleno = 5 (0x5), region = 128 }

</bundles_post_ra>
